<compile_context>
chip_gen: v7x
topology: tpu7x:2x2x1
jax: 0.10.0
libtpu: 0.0.40
codegen_flags: <defaults>
</compile_context>

<pallas_src>
import math
import functools

import jax
import jax.numpy as jnp
from jax.experimental import pallas as pl
from jax.experimental.pallas import tpu as pltpu


def _round_up(a, b):
    return -(-a // b) * b


def _vmem_limit_bytes():
    # Leave headroom below physical VMEM (critical on v7x's 64 MiB); use most
    # of the 128 MiB on v5e/v6e.  Conservative fallback if the query fails.
    try:
        cap = pltpu.get_tpu_info().vmem_capacity_bytes
        return int(min(cap - 12 * 1024 * 1024, 112 * 1024 * 1024))
    except Exception:
        return 48 * 1024 * 1024


# ---------------------------------------------------------------------------
# Kernel 1: fused QKV projection, head split, q pre-scaling, K pre-transpose.
# ---------------------------------------------------------------------------
def _qkv_proj_kernel(x_ref, wqkv_ref, bqkv_ref, q_ref, k_ref, v_ref, *,
                     num_heads, head_dim, scale):
    H, Dh = num_heads, head_dim
    E = H * Dh

    x = x_ref[0]                                              # (T, E) bf16 (cast in wrapper)
    y = jnp.dot(x, wqkv_ref[...],
                preferred_element_type=jnp.float32) + bqkv_ref[...]   # (T, 3E) f32

    q = y[:, :E] * scale                                      # pre-scale q once (O(S*E))
    kT = y[:, E:2 * E].T                                      # (E, T): lane-dense along T
    v = y[:, 2 * E:]

    # Head split via static slices only (no minor-dim reshapes in the kernel).
    for h in range(H):
        sl = slice(h * Dh, (h + 1) * Dh)
        q_ref[0, h] = q[:, sl].astype(jnp.bfloat16)           # (T, Dh)
        k_ref[0, h] = kT[sl, :].astype(jnp.bfloat16)          # (Dh, T) MXU-stationary
        v_ref[0, h] = v[:, sl].astype(jnp.bfloat16)           # (T, Dh)


# ---------------------------------------------------------------------------
# Kernel 2: banded (sliding-window) attention, online softmax, fused out-proj.
# ---------------------------------------------------------------------------
def _swa_attn_kernel(q_ref, k_ref, v_ref, wo_ref, bo_ref, o_ref,
                     m_sc, l_sc, acc_sc, ctx_sc, *,
                     window_length, tile, seq_len, n_kv_tiles, nb,
                     num_heads, head_dim):
    qi = pl.program_id(1)
    ki = pl.program_id(2)

    @pl.when(ki == 0)
    def _init():
        m_sc[...] = jnp.full(m_sc.shape, -1e30, jnp.float32)
        l_sc[...] = jnp.zeros(l_sc.shape, jnp.float32)
        acc_sc[...] = jnp.zeros(acc_sc.shape, jnp.float32)

    # Unclamped kv tile index for this band step; skip tiles outside [0, n_kv).
    kv_idx = qi + ki - nb
    in_range = jnp.logical_and(kv_idx >= 0, kv_idx < n_kv_tiles)

    q0 = qi * tile
    k0 = kv_idx * tile
    d = q0 - k0
    # Scalar fast path: every (row, col) pair of this tile is inside the band
    # and every key column is a real (non-padded) position -> no mask work.
    fully_in_band = jnp.maximum(jnp.abs(d + (tile - 1)),
                                jnp.abs(d - (tile - 1))) <= window_length
    all_cols_valid = (k0 + tile) <= seq_len
    fast = jnp.logical_and(fully_in_band, all_cols_valid)

    def step(masked):
        q = q_ref[0]                                          # (H, Tq, Dh) bf16, pre-scaled
        kT = k_ref[0]                                         # (H, Dh, Tk) bf16
        v = v_ref[0]                                          # (H, Tk, Dh) bf16

        s = jnp.einsum('hqd,hdk->hqk', q, kT,
                       preferred_element_type=jnp.float32)    # (H, Tq, Tk) f32

        if masked:
            rel = (jax.lax.broadcasted_iota(jnp.int32, (tile, tile), 0)
                   - jax.lax.broadcasted_iota(jnp.int32, (tile, tile), 1))
            cols = k0 + jax.lax.broadcasted_iota(jnp.int32, (tile, tile), 1)
            mask = jnp.logical_and(jnp.abs(rel + d) <= window_length,
                                   cols < seq_len)            # band & non-padded keys
            s = jnp.where(mask[None, :, :], s, -1e30)         # mask BEFORE the row max

        m_prev = m_sc[...]
        m_new = jnp.maximum(m_prev, jnp.max(s, axis=-1, keepdims=True))
        p = jnp.exp(s - m_new)
        if masked:
            p = jnp.where(mask[None, :, :], p, 0.0)           # exact zero for masked cols
        alpha = jnp.exp(m_prev - m_new)

        l_sc[...] = alpha * l_sc[...] + jnp.sum(p, axis=-1, keepdims=True)
        acc_sc[...] = alpha * acc_sc[...] + jnp.einsum(
            'hqk,hkd->hqd', p.astype(jnp.bfloat16), v,
            preferred_element_type=jnp.float32)
        m_sc[...] = m_new

    @pl.when(jnp.logical_and(in_range, fast))
    def _step_fast():
        step(masked=False)

    @pl.when(jnp.logical_and(in_range, jnp.logical_not(fast)))
    def _step_masked():
        step(masked=True)

    @pl.when(ki == pl.num_programs(2) - 1)
    def _finalize():
        H, Dh = num_heads, head_dim
        # Normalize per head (approx reciprocal -> EUP slot) and scatter into a
        # lane-dense (T, E) slab with static slices; one big out-proj matmul.
        for h in range(H):
            inv = pl.reciprocal(l_sc[h], approx=True)         # (Tq, 1)
            ctx_sc[:, h * Dh:(h + 1) * Dh] = acc_sc[h] * inv
        out = jnp.dot(ctx_sc[...].astype(jnp.bfloat16), wo_ref[...],
                      preferred_element_type=jnp.float32) + bo_ref[...]
        o_ref[0] = out.astype(o_ref.dtype)


# ---------------------------------------------------------------------------
# Wrapper
# ---------------------------------------------------------------------------
def prepare_params(params):
    """Fuse/cast projection weights ONCE (hoisted out of the per-call path)."""
    return dict(
        wqkv=jnp.concatenate([params["wq"], params["wk"], params["wv"]],
                             axis=1).astype(jnp.bfloat16),
        bqkv=jnp.concatenate([params["bq"], params["bk"], params["bv"]],
                             axis=1).astype(jnp.float32),
        wo=params["wo"].astype(jnp.bfloat16),
        bo=params["bo"].astype(jnp.float32),
    )


def sliding_window_attention(x, prepared, *, num_heads, window_length, q_tile=128):
    """x: (B, S, E) float32.  prepared: output of prepare_params."""
    B, S, E = x.shape
    H = num_heads
    assert E % H == 0, "embed_dim must be divisible by num_heads"
    assert q_tile % 8 == 0
    Dh = E // H

    # Pad S instead of searching for divisors: tiles stay (8,128)-aligned on
    # every generation.  Use q_tile=256 on v6e/v7x when window_length >> 128.
    T = _round_up(S, 8) if S <= q_tile else q_tile
    S_pad = _round_up(S, T)
    n_s = S_pad // T
    nb = min(-(-window_length // T), n_s - 1)    # band tiles on each side of diag
    n_band = 2 * nb + 1

    out_dtype = x.dtype
    # bf16 + zero-pad the streamed input once in the wrapper (halves x DMA bytes).
    x_p = jnp.pad(x.astype(jnp.bfloat16), ((0, 0), (0, S_pad - S), (0, 0)))

    wqkv, bqkv = prepared["wqkv"], prepared["bqkv"]
    wo, bo = prepared["wo"], prepared["bo"]
    vmem_limit = _vmem_limit_bytes()

    def run(const_kwargs):
        # ---- Kernel 1: QKV projection into head layout, K pre-transposed. ----
        head_block = pl.BlockSpec((1, H, T, Dh), lambda b, s: (b, 0, s, 0))
        kT_block = pl.BlockSpec((1, H, Dh, T), lambda b, s: (b, 0, 0, s))
        q, kT, v = pl.pallas_call(
            functools.partial(_qkv_proj_kernel, num_heads=H, head_dim=Dh,
                              scale=1.0 / math.sqrt(Dh)),
            out_shape=(jax.ShapeDtypeStruct((B, H, S_pad, Dh), jnp.bfloat16),
                       jax.ShapeDtypeStruct((B, H, Dh, S_pad), jnp.bfloat16),
                       jax.ShapeDtypeStruct((B, H, S_pad, Dh), jnp.bfloat16)),
            grid_spec=pltpu.PrefetchScalarGridSpec(
                num_scalar_prefetch=0,
                grid=(B, n_s),
                in_specs=[
                    pl.BlockSpec((1, T, E), lambda b, s: (b, s, 0)),          # x tile (bf16)
                    pl.BlockSpec((E, 3 * E), lambda b, s: (0, 0), **const_kwargs),
                    pl.BlockSpec((1, 3 * E), lambda b, s: (0, 0), **const_kwargs),
                ],
                out_specs=[head_block, kT_block, head_block],
            ),
            compiler_params=pltpu.CompilerParams(
                dimension_semantics=("parallel", "parallel"),
                vmem_limit_bytes=vmem_limit),
        )(x_p, wqkv, bqkv)

        # ---- Kernel 2: banded attention + output projection. ----
        def q_map(b, qi, ki):
            return (b, 0, qi, 0)

        def kv_map(b, qi, ki):
            kv = jnp.clip(qi + ki - nb, 0, n_s - 1)   # clamp keeps DMA in bounds
            return (b, 0, kv, 0)

        def kT_map(b, qi, ki):
            kv = jnp.clip(qi + ki - nb, 0, n_s - 1)
            return (b, 0, 0, kv)

        out = pl.pallas_call(
            functools.partial(_swa_attn_kernel, window_length=window_length,
                              tile=T, seq_len=S, n_kv_tiles=n_s, nb=nb,
                              num_heads=H, head_dim=Dh),
            out_shape=jax.ShapeDtypeStruct((B, S_pad, E), out_dtype),
            grid_spec=pltpu.PrefetchScalarGridSpec(
                num_scalar_prefetch=0,
                grid=(B, n_s, n_band),
                in_specs=[
                    pl.BlockSpec((1, H, T, Dh), q_map),                       # q tile
                    pl.BlockSpec((1, H, Dh, T), kT_map),                      # K^T band tile
                    pl.BlockSpec((1, H, T, Dh), kv_map),                      # v band tile
                    pl.BlockSpec((E, E), lambda b, qi, ki: (0, 0), **const_kwargs),
                    pl.BlockSpec((1, E), lambda b, qi, ki: (0, 0), **const_kwargs),
                ],
                out_specs=pl.BlockSpec((1, T, E), lambda b, qi, ki: (b, qi, 0)),
                scratch_shapes=[
                    pltpu.VMEM((H, T, 1), jnp.float32),     # running max
                    pltpu.VMEM((H, T, 1), jnp.float32),     # running denom
                    pltpu.VMEM((H, T, Dh), jnp.float32),    # running accum
                    pltpu.VMEM((T, E), jnp.float32),        # lane-dense ctx slab
                ],
            ),
            compiler_params=pltpu.CompilerParams(
                dimension_semantics=("parallel", "parallel", "arbitrary"),
                vmem_limit_bytes=vmem_limit),
        )(q, kT, v, wo, bo)
        return out

    # Single-buffer the constant weight/bias blocks; fall back cleanly if this
    # jax version does not support pipeline_mode / Buffered(1).
    try:
        out = run({"pipeline_mode": pl.Buffered(1)})
    except Exception:
        out = run({})
    return out[:, :S, :]


# ---------------------------------------------------------------------------
# Pure-JAX reference (mirrors the PyTorch per-position loop, f32 throughout).
# ---------------------------------------------------------------------------
def _reference(x, params, *, num_heads, window_length):
    B, S, E = x.shape
    Dh = E // num_heads
    q = x @ params["wq"] + params["bq"][0]
    k = x @ params["wk"] + params["bk"][0]
    v = x @ params["wv"] + params["bv"][0]
    q = q.reshape(B, S, num_heads, Dh).transpose(0, 2, 1, 3)
    k = k.reshape(B, S, num_heads, Dh).transpose(0, 2, 1, 3)
    v = v.reshape(B, S, num_heads, Dh).transpose(0, 2, 1, 3)
    out = jnp.zeros_like(x)
    for i in range(S):
        s0 = max(0, i - window_length)
        s1 = min(S, i + window_length + 1)
        qi = q[:, :, i:i + 1, :]
        kw = k[:, :, s0:s1, :]
        vw = v[:, :, s0:s1, :]
        sc = jnp.einsum('bhqd,bhkd->bhqk', qi, kw) / math.sqrt(Dh)
        w = jax.nn.softmax(sc, axis=-1)
        ctx = jnp.einsum('bhqk,bhkd->bhqd', w, vw).transpose(0, 2, 1, 3)
        out = out.at[:, i:i + 1, :].set(ctx.reshape(B, 1, E))
    return out @ params["wo"] + params["bo"][0]


if __name__ == "__main__":
    B, S, E = 2, 8, 32
    num_heads = 4
    window_length = 2

    key = jax.random.PRNGKey(0)
    keys = jax.random.split(key, 10)
    x = jax.random.normal(keys[0], (B, S, E), dtype=jnp.float32)

    def linear_init(kw, kb, fan_in, fan_out):
        bound = 1.0 / math.sqrt(fan_in)
        w = jax.random.uniform(kw, (fan_in, fan_out), jnp.float32, -bound, bound)
        b = jax.random.uniform(kb, (1, fan_out), jnp.float32, -bound, bound)
        return w, b

    wq, bq = linear_init(keys[1], keys[2], E, E)
    wk, bk = linear_init(keys[3], keys[4], E, E)
    wv, bv = linear_init(keys[5], keys[6], E, E)
    wo, bo = linear_init(keys[7], keys[8], E, E)
    params = dict(wq=wq, bq=bq, wk=wk, bk=bk, wv=wv, bv=bv, wo=wo, bo=bo)

    prepared = prepare_params(params)   # hoisted weight fusion/cast (done once)

    out = sliding_window_attention(x, prepared,
                                   num_heads=num_heads,
                                   window_length=window_length)
    out = jax.block_until_ready(out)

    ref = _reference(x, params, num_heads=num_heads, window_length=window_length)
    assert out.shape == (B, S, E)
    # bf16 MXU operands + approx reciprocal -> loosened tolerance vs f32 reference.
    assert jnp.allclose(out, ref, atol=5e-2, rtol=5e-2), (
        f"mismatch vs reference, max|diff|={float(jnp.max(jnp.abs(out - ref)))}")

    print("KERNEL_OK")
</pallas_src>

<mosaic_0001>
module attributes {stable_mosaic.version = 11 : i64} {
  func.func @_qkv_proj_kernel(%arg0: i32, %arg1: i32, %arg2: memref<1x8x32xbf16, #tpu.memory_space<vmem>>, %arg3: memref<32x96xbf16, #tpu.memory_space<vmem>>, %arg4: memref<1x96xf32, #tpu.memory_space<vmem>>, %arg5: memref<1x4x8x8xbf16, #tpu.memory_space<vmem>>, %arg6: memref<1x4x8x8xbf16, #tpu.memory_space<vmem>>, %arg7: memref<1x4x8x8xbf16, #tpu.memory_space<vmem>>) attributes {dimension_semantics = [#tpu.dimension_semantics<parallel>, #tpu.dimension_semantics<parallel>], iteration_bounds = array<i64: 2, 1>, scalar_prefetch = 0 : i64, scratch_operands = 0 : i64, tpu.core_type = #tpu.core_type<tc>, window_params = [{transform_indices = @transform_0, window_bounds = array<i64: 1, 8, 32>}, {pipeline_mode = #tpu.pipeline_mode<synchronous>, transform_indices = @transform_1, window_bounds = array<i64: 32, 96>}, {pipeline_mode = #tpu.pipeline_mode<synchronous>, transform_indices = @transform_2, window_bounds = array<i64: 1, 96>}, {transform_indices = @transform_3, window_bounds = array<i64: 1, 4, 8, 8>}, {transform_indices = @transform_4, window_bounds = array<i64: 1, 4, 8, 8>}, {transform_indices = @transform_5, window_bounds = array<i64: 1, 4, 8, 8>}]} {
    %c0 = arith.constant 0 : index
    %c0_0 = arith.constant 0 : index
    %c0_1 = arith.constant 0 : index
    %0 = vector.load %arg2[%c0, %c0_0, %c0_1] : memref<1x8x32xbf16, #tpu.memory_space<vmem>>, vector<1x8x32xbf16>
    %1 = vector.shape_cast %0 : vector<1x8x32xbf16> to vector<8x32xbf16>
    %c0_2 = arith.constant 0 : index
    %c0_3 = arith.constant 0 : index
    %2 = vector.load %arg3[%c0_2, %c0_3] : memref<32x96xbf16, #tpu.memory_space<vmem>>, vector<32x96xbf16>
    %cst = arith.constant dense<0.000000e+00> : vector<8x96xf32>
    %3 = tpu.matmul %1, %2, %cst {dimension_numbers = #tpu.dot_dimension_numbers<[1], [0], [0], [1], [0, 0, 1, 1], [], []>} : vector<8x32xbf16>, vector<32x96xbf16>, vector<8x96xf32> -> vector<8x96xf32>
    %c0_4 = arith.constant 0 : index
    %c0_5 = arith.constant 0 : index
    %4 = vector.load %arg4[%c0_4, %c0_5] : memref<1x96xf32, #tpu.memory_space<vmem>>, vector<1x96xf32>
    %5 = vector.broadcast %4 : vector<1x96xf32> to vector<8x96xf32>
    %6 = arith.addf %3, %5 : vector<8x96xf32>
    %7 = vector.extract_strided_slice %6 {offsets = [0, 0], sizes = [8, 32], strides = [1, 1]} : vector<8x96xf32> to vector<8x32xf32>
    %cst_6 = arith.constant 0.353553385 : f32
    %8 = vector.broadcast %cst_6 : f32 to vector<8x32xf32>
    %9 = arith.mulf %7, %8 : vector<8x32xf32>
    %10 = vector.extract_strided_slice %6 {offsets = [0, 32], sizes = [8, 32], strides = [1, 1]} : vector<8x96xf32> to vector<8x32xf32>
    %11 = tpu.transpose %10, [1, 0] : vector<8x32xf32> -> vector<32x8xf32>
    %12 = vector.extract_strided_slice %6 {offsets = [0, 64], sizes = [8, 32], strides = [1, 1]} : vector<8x96xf32> to vector<8x32xf32>
    %13 = vector.extract_strided_slice %9 {offsets = [0, 0], sizes = [8, 8], strides = [1, 1]} : vector<8x32xf32> to vector<8x8xf32>
    %14 = arith.truncf %13 : vector<8x8xf32> to vector<8x8xbf16>
    %c0_7 = arith.constant 0 : index
    %c0_8 = arith.constant 0 : index
    %c0_9 = arith.constant 0 : index
    %c0_10 = arith.constant 0 : index
    %15 = vector.load %arg5[%c0_7, %c0_8, %c0_9, %c0_10] : memref<1x4x8x8xbf16, #tpu.memory_space<vmem>>, vector<1x1x8x8xbf16>
    %16 = vector.shape_cast %15 : vector<1x1x8x8xbf16> to vector<8x8xbf16>
    %17 = vector.shape_cast %14 : vector<8x8xbf16> to vector<1x1x8x8xbf16>
    tpu.vector_store %arg5[%c0_7, %c0_8, %c0_9, %c0_10], %17 {strides = array<i32>} : memref<1x4x8x8xbf16, #tpu.memory_space<vmem>>, vector<1x1x8x8xbf16>,
    %18 = vector.extract_strided_slice %11 {offsets = [0, 0], sizes = [8, 8], strides = [1, 1]} : vector<32x8xf32> to vector<8x8xf32>
    %19 = arith.truncf %18 : vector<8x8xf32> to vector<8x8xbf16>
    %c0_11 = arith.constant 0 : index
    %c0_12 = arith.constant 0 : index
    %c0_13 = arith.constant 0 : index
    %c0_14 = arith.constant 0 : index
    %20 = vector.load %arg6[%c0_11, %c0_12, %c0_13, %c0_14] : memref<1x4x8x8xbf16, #tpu.memory_space<vmem>>, vector<1x1x8x8xbf16>
    %21 = vector.shape_cast %20 : vector<1x1x8x8xbf16> to vector<8x8xbf16>
    %22 = vector.shape_cast %19 : vector<8x8xbf16> to vector<1x1x8x8xbf16>
    tpu.vector_store %arg6[%c0_11, %c0_12, %c0_13, %c0_14], %22 {strides = array<i32>} : memref<1x4x8x8xbf16, #tpu.memory_space<vmem>>, vector<1x1x8x8xbf16>,
    %23 = vector.extract_strided_slice %12 {offsets = [0, 0], sizes = [8, 8], strides = [1, 1]} : vector<8x32xf32> to vector<8x8xf32>
    %24 = arith.truncf %23 : vector<8x8xf32> to vector<8x8xbf16>
    %c0_15 = arith.constant 0 : index
    %c0_16 = arith.constant 0 : index
    %c0_17 = arith.constant 0 : index
    %c0_18 = arith.constant 0 : index
    %25 = vector.load %arg7[%c0_15, %c0_16, %c0_17, %c0_18] : memref<1x4x8x8xbf16, #tpu.memory_space<vmem>>, vector<1x1x8x8xbf16>
    %26 = vector.shape_cast %25 : vector<1x1x8x8xbf16> to vector<8x8xbf16>
    %27 = vector.shape_cast %24 : vector<8x8xbf16> to vector<1x1x8x8xbf16>
    tpu.vector_store %arg7[%c0_15, %c0_16, %c0_17, %c0_18], %27 {strides = array<i32>} : memref<1x4x8x8xbf16, #tpu.memory_space<vmem>>, vector<1x1x8x8xbf16>,
    %28 = vector.extract_strided_slice %9 {offsets = [0, 8], sizes = [8, 8], strides = [1, 1]} : vector<8x32xf32> to vector<8x8xf32>
    %29 = arith.truncf %28 : vector<8x8xf32> to vector<8x8xbf16>
    %c0_19 = arith.constant 0 : index
    %c1 = arith.constant 1 : index
    %c0_20 = arith.constant 0 : index
    %c0_21 = arith.constant 0 : index
    %30 = vector.load %arg5[%c0_19, %c1, %c0_20, %c0_21] : memref<1x4x8x8xbf16, #tpu.memory_space<vmem>>, vector<1x1x8x8xbf16>
    %31 = vector.shape_cast %30 : vector<1x1x8x8xbf16> to vector<8x8xbf16>
    %32 = vector.shape_cast %29 : vector<8x8xbf16> to vector<1x1x8x8xbf16>
    tpu.vector_store %arg5[%c0_19, %c1, %c0_20, %c0_21], %32 {strides = array<i32>} : memref<1x4x8x8xbf16, #tpu.memory_space<vmem>>, vector<1x1x8x8xbf16>,
    %33 = vector.extract_strided_slice %11 {offsets = [8, 0], sizes = [8, 8], strides = [1, 1]} : vector<32x8xf32> to vector<8x8xf32>
    %34 = arith.truncf %33 : vector<8x8xf32> to vector<8x8xbf16>
    %c0_22 = arith.constant 0 : index
    %c1_23 = arith.constant 1 : index
    %c0_24 = arith.constant 0 : index
    %c0_25 = arith.constant 0 : index
    %35 = vector.load %arg6[%c0_22, %c1_23, %c0_24, %c0_25] : memref<1x4x8x8xbf16, #tpu.memory_space<vmem>>, vector<1x1x8x8xbf16>
    %36 = vector.shape_cast %35 : vector<1x1x8x8xbf16> to vector<8x8xbf16>
    %37 = vector.shape_cast %34 : vector<8x8xbf16> to vector<1x1x8x8xbf16>
    tpu.vector_store %arg6[%c0_22, %c1_23, %c0_24, %c0_25], %37 {strides = array<i32>} : memref<1x4x8x8xbf16, #tpu.memory_space<vmem>>, vector<1x1x8x8xbf16>,
    %38 = vector.extract_strided_slice %12 {offsets = [0, 8], sizes = [8, 8], strides = [1, 1]} : vector<8x32xf32> to vector<8x8xf32>
    %39 = arith.truncf %38 : vector<8x8xf32> to vector<8x8xbf16>
    %c0_26 = arith.constant 0 : index
    %c1_27 = arith.constant 1 : index
    %c0_28 = arith.constant 0 : index
    %c0_29 = arith.constant 0 : index
    %40 = vector.load %arg7[%c0_26, %c1_27, %c0_28, %c0_29] : memref<1x4x8x8xbf16, #tpu.memory_space<vmem>>, vector<1x1x8x8xbf16>
    %41 = vector.shape_cast %40 : vector<1x1x8x8xbf16> to vector<8x8xbf16>
    %42 = vector.shape_cast %39 : vector<8x8xbf16> to vector<1x1x8x8xbf16>
    tpu.vector_store %arg7[%c0_26, %c1_27, %c0_28, %c0_29], %42 {strides = array<i32>} : memref<1x4x8x8xbf16, #tpu.memory_space<vmem>>, vector<1x1x8x8xbf16>,
    %43 = vector.extract_strided_slice %9 {offsets = [0, 16], sizes = [8, 8], strides = [1, 1]} : vector<8x32xf32> to vector<8x8xf32>
    %44 = arith.truncf %43 : vector<8x8xf32> to vector<8x8xbf16>
    %c0_30 = arith.constant 0 : index
    %c2 = arith.constant 2 : index
    %c0_31 = arith.constant 0 : index
    %c0_32 = arith.constant 0 : index
    %45 = vector.load %arg5[%c0_30, %c2, %c0_31, %c0_32] : memref<1x4x8x8xbf16, #tpu.memory_space<vmem>>, vector<1x1x8x8xbf16>
    %46 = vector.shape_cast %45 : vector<1x1x8x8xbf16> to vector<8x8xbf16>
    %47 = vector.shape_cast %44 : vector<8x8xbf16> to vector<1x1x8x8xbf16>
    tpu.vector_store %arg5[%c0_30, %c2, %c0_31, %c0_32], %47 {strides = array<i32>} : memref<1x4x8x8xbf16, #tpu.memory_space<vmem>>, vector<1x1x8x8xbf16>,
    %48 = vector.extract_strided_slice %11 {offsets = [16, 0], sizes = [8, 8], strides = [1, 1]} : vector<32x8xf32> to vector<8x8xf32>
    %49 = arith.truncf %48 : vector<8x8xf32> to vector<8x8xbf16>
    %c0_33 = arith.constant 0 : index
    %c2_34 = arith.constant 2 : index
    %c0_35 = arith.constant 0 : index
    %c0_36 = arith.constant 0 : index
    %50 = vector.load %arg6[%c0_33, %c2_34, %c0_35, %c0_36] : memref<1x4x8x8xbf16, #tpu.memory_space<vmem>>, vector<1x1x8x8xbf16>
    %51 = vector.shape_cast %50 : vector<1x1x8x8xbf16> to vector<8x8xbf16>
    %52 = vector.shape_cast %49 : vector<8x8xbf16> to vector<1x1x8x8xbf16>
    tpu.vector_store %arg6[%c0_33, %c2_34, %c0_35, %c0_36], %52 {strides = array<i32>} : memref<1x4x8x8xbf16, #tpu.memory_space<vmem>>, vector<1x1x8x8xbf16>,
    %53 = vector.extract_strided_slice %12 {offsets = [0, 16], sizes = [8, 8], strides = [1, 1]} : vector<8x32xf32> to vector<8x8xf32>
    %54 = arith.truncf %53 : vector<8x8xf32> to vector<8x8xbf16>
    %c0_37 = arith.constant 0 : index
    %c2_38 = arith.constant 2 : index
    %c0_39 = arith.constant 0 : index
    %c0_40 = arith.constant 0 : index
    %55 = vector.load %arg7[%c0_37, %c2_38, %c0_39, %c0_40] : memref<1x4x8x8xbf16, #tpu.memory_space<vmem>>, vector<1x1x8x8xbf16>
    %56 = vector.shape_cast %55 : vector<1x1x8x8xbf16> to vector<8x8xbf16>
    %57 = vector.shape_cast %54 : vector<8x8xbf16> to vector<1x1x8x8xbf16>
    tpu.vector_store %arg7[%c0_37, %c2_38, %c0_39, %c0_40], %57 {strides = array<i32>} : memref<1x4x8x8xbf16, #tpu.memory_space<vmem>>, vector<1x1x8x8xbf16>,
    %58 = vector.extract_strided_slice %9 {offsets = [0, 24], sizes = [8, 8], strides = [1, 1]} : vector<8x32xf32> to vector<8x8xf32>
    %59 = arith.truncf %58 : vector<8x8xf32> to vector<8x8xbf16>
    %c0_41 = arith.constant 0 : index
    %c3 = arith.constant 3 : index
    %c0_42 = arith.constant 0 : index
    %c0_43 = arith.constant 0 : index
    %60 = vector.load %arg5[%c0_41, %c3, %c0_42, %c0_43] : memref<1x4x8x8xbf16, #tpu.memory_space<vmem>>, vector<1x1x8x8xbf16>
    %61 = vector.shape_cast %60 : vector<1x1x8x8xbf16> to vector<8x8xbf16>
    %62 = vector.shape_cast %59 : vector<8x8xbf16> to vector<1x1x8x8xbf16>
    tpu.vector_store %arg5[%c0_41, %c3, %c0_42, %c0_43], %62 {strides = array<i32>} : memref<1x4x8x8xbf16, #tpu.memory_space<vmem>>, vector<1x1x8x8xbf16>,
    %63 = vector.extract_strided_slice %11 {offsets = [24, 0], sizes = [8, 8], strides = [1, 1]} : vector<32x8xf32> to vector<8x8xf32>
    %64 = arith.truncf %63 : vector<8x8xf32> to vector<8x8xbf16>
    %c0_44 = arith.constant 0 : index
    %c3_45 = arith.constant 3 : index
    %c0_46 = arith.constant 0 : index
    %c0_47 = arith.constant 0 : index
    %65 = vector.load %arg6[%c0_44, %c3_45, %c0_46, %c0_47] : memref<1x4x8x8xbf16, #tpu.memory_space<vmem>>, vector<1x1x8x8xbf16>
    %66 = vector.shape_cast %65 : vector<1x1x8x8xbf16> to vector<8x8xbf16>
    %67 = vector.shape_cast %64 : vector<8x8xbf16> to vector<1x1x8x8xbf16>
    tpu.vector_store %arg6[%c0_44, %c3_45, %c0_46, %c0_47], %67 {strides = array<i32>} : memref<1x4x8x8xbf16, #tpu.memory_space<vmem>>, vector<1x1x8x8xbf16>,
    %68 = vector.extract_strided_slice %12 {offsets = [0, 24], sizes = [8, 8], strides = [1, 1]} : vector<8x32xf32> to vector<8x8xf32>
    %69 = arith.truncf %68 : vector<8x8xf32> to vector<8x8xbf16>
    %c0_48 = arith.constant 0 : index
    %c3_49 = arith.constant 3 : index
    %c0_50 = arith.constant 0 : index
    %c0_51 = arith.constant 0 : index
    %70 = vector.load %arg7[%c0_48, %c3_49, %c0_50, %c0_51] : memref<1x4x8x8xbf16, #tpu.memory_space<vmem>>, vector<1x1x8x8xbf16>
    %71 = vector.shape_cast %70 : vector<1x1x8x8xbf16> to vector<8x8xbf16>
    %72 = vector.shape_cast %69 : vector<8x8xbf16> to vector<1x1x8x8xbf16>
    tpu.vector_store %arg7[%c0_48, %c3_49, %c0_50, %c0_51], %72 {strides = array<i32>} : memref<1x4x8x8xbf16, #tpu.memory_space<vmem>>, vector<1x1x8x8xbf16>,
    return
  }
  func.func @transform_0(%arg0: i32, %arg1: i32) -> (i32, i32, i32) {
    %c0_i32 = arith.constant 0 : i32
    %c0_i32_0 = arith.constant 0 : i32
    return %arg0, %arg1, %c0_i32 : i32, i32, i32
  }
  func.func @transform_1(%arg0: i32, %arg1: i32) -> (i32, i32) {
    %c0_i32 = arith.constant 0 : i32
    %c0_i32_0 = arith.constant 0 : i32
    %c0_i32_1 = arith.constant 0 : i32
    return %c0_i32, %c0_i32_0 : i32, i32
  }
  func.func @transform_2(%arg0: i32, %arg1: i32) -> (i32, i32) {
    %c0_i32 = arith.constant 0 : i32
    %c0_i32_0 = arith.constant 0 : i32
    %c0_i32_1 = arith.constant 0 : i32
    return %c0_i32, %c0_i32_0 : i32, i32
  }
  func.func @transform_3(%arg0: i32, %arg1: i32) -> (i32, i32, i32, i32) {
    %c0_i32 = arith.constant 0 : i32
    %c0_i32_0 = arith.constant 0 : i32
    %c0_i32_1 = arith.constant 0 : i32
    return %arg0, %c0_i32, %arg1, %c0_i32_0 : i32, i32, i32, i32
  }
  func.func @transform_4(%arg0: i32, %arg1: i32) -> (i32, i32, i32, i32) {
    %c0_i32 = arith.constant 0 : i32
    %c0_i32_0 = arith.constant 0 : i32
    %c0_i32_1 = arith.constant 0 : i32
    return %arg0, %c0_i32, %c0_i32_0, %arg1 : i32, i32, i32, i32
  }
  func.func @transform_5(%arg0: i32, %arg1: i32) -> (i32, i32, i32, i32) {
    %c0_i32 = arith.constant 0 : i32
    %c0_i32_0 = arith.constant 0 : i32
    %c0_i32_1 = arith.constant 0 : i32
    return %arg0, %c0_i32, %arg1, %c0_i32_0 : i32, i32, i32, i32
  }
}

module attributes {stable_mosaic.version = 11 : i64} {
  func.func @_qkv_proj_kernel(%arg0: i32, %arg1: i32, %arg2: memref<1x8x32xbf16, #tpu.memory_space<vmem>>, %arg3: memref<32x96xbf16, #tpu.memory_space<vmem>>, %arg4: memref<1x96xf32, #tpu.memory_space<vmem>>, %arg5: memref<1x4x8x8xbf16, #tpu.memory_space<vmem>>, %arg6: memref<1x4x8x8xbf16, #tpu.memory_space<vmem>>, %arg7: memref<1x4x8x8xbf16, #tpu.memory_space<vmem>>) attributes {dimension_semantics = [#tpu.dimension_semantics<parallel>, #tpu.dimension_semantics<parallel>], iteration_bounds = array<i64: 2, 1>, scalar_prefetch = 0 : i64, scratch_operands = 0 : i64, tpu.core_type = #tpu.core_type<tc>, window_params = [{transform_indices = @transform_0, window_bounds = array<i64: 1, 8, 32>}, {pipeline_mode = #tpu.pipeline_mode<synchronous>, transform_indices = @transform_1, window_bounds = array<i64: 32, 96>}, {pipeline_mode = #tpu.pipeline_mode<synchronous>, transform_indices = @transform_2, window_bounds = array<i64: 1, 96>}, {transform_indices = @transform_3, window_bounds = array<i64: 1, 4, 8, 8>}, {transform_indices = @transform_4, window_bounds = array<i64: 1, 4, 8, 8>}, {transform_indices = @transform_5, window_bounds = array<i64: 1, 4, 8, 8>}]} {
    %c0 = arith.constant 0 : index
    %c0_0 = arith.constant 0 : index
    %c0_1 = arith.constant 0 : index
    %0 = vector.load %arg2[%c0, %c0_0, %c0_1] : memref<1x8x32xbf16, #tpu.memory_space<vmem>>, vector<1x8x32xbf16>
    %1 = vector.shape_cast %0 : vector<1x8x32xbf16> to vector<8x32xbf16>
    %c0_2 = arith.constant 0 : index
    %c0_3 = arith.constant 0 : index
    %2 = vector.load %arg3[%c0_2, %c0_3] : memref<32x96xbf16, #tpu.memory_space<vmem>>, vector<32x96xbf16>
    %cst = arith.constant dense<0.000000e+00> : vector<8x96xf32>
    %3 = tpu.matmul %1, %2, %cst {dimension_numbers = #tpu.dot_dimension_numbers<[1], [0], [0], [1], [0, 0, 1, 1], [], []>} : vector<8x32xbf16>, vector<32x96xbf16>, vector<8x96xf32> -> vector<8x96xf32>
    %c0_4 = arith.constant 0 : index
    %c0_5 = arith.constant 0 : index
    %4 = vector.load %arg4[%c0_4, %c0_5] : memref<1x96xf32, #tpu.memory_space<vmem>>, vector<1x96xf32>
    %5 = vector.broadcast %4 : vector<1x96xf32> to vector<8x96xf32>
    %6 = arith.addf %3, %5 : vector<8x96xf32>
    %7 = vector.extract_strided_slice %6 {offsets = [0, 0], sizes = [8, 32], strides = [1, 1]} : vector<8x96xf32> to vector<8x32xf32>
    %cst_6 = arith.constant 0.353553385 : f32
    %8 = vector.broadcast %cst_6 : f32 to vector<8x32xf32>
    %9 = arith.mulf %7, %8 : vector<8x32xf32>
    %10 = vector.extract_strided_slice %6 {offsets = [0, 32], sizes = [8, 32], strides = [1, 1]} : vector<8x96xf32> to vector<8x32xf32>
    %11 = tpu.transpose %10, [1, 0] : vector<8x32xf32> -> vector<32x8xf32>
    %12 = vector.extract_strided_slice %6 {offsets = [0, 64], sizes = [8, 32], strides = [1, 1]} : vector<8x96xf32> to vector<8x32xf32>
    %13 = vector.extract_strided_slice %9 {offsets = [0, 0], sizes = [8, 8], strides = [1, 1]} : vector<8x32xf32> to vector<8x8xf32>
    %14 = arith.truncf %13 : vector<8x8xf32> to vector<8x8xbf16>
    %c0_7 = arith.constant 0 : index
    %c0_8 = arith.constant 0 : index
    %c0_9 = arith.constant 0 : index
    %c0_10 = arith.constant 0 : index
    %15 = vector.load %arg5[%c0_7, %c0_8, %c0_9, %c0_10] : memref<1x4x8x8xbf16, #tpu.memory_space<vmem>>, vector<1x1x8x8xbf16>
    %16 = vector.shape_cast %15 : vector<1x1x8x8xbf16> to vector<8x8xbf16>
    %17 = vector.shape_cast %14 : vector<8x8xbf16> to vector<1x1x8x8xbf16>
    tpu.vector_store %arg5[%c0_7, %c0_8, %c0_9, %c0_10], %17 {strides = array<i32>} : memref<1x4x8x8xbf16, #tpu.memory_space<vmem>>, vector<1x1x8x8xbf16>,
    %18 = vector.extract_strided_slice %11 {offsets = [0, 0], sizes = [8, 8], strides = [1, 1]} : vector<32x8xf32> to vector<8x8xf32>
    %19 = arith.truncf %18 : vector<8x8xf32> to vector<8x8xbf16>
    %c0_11 = arith.constant 0 : index
    %c0_12 = arith.constant 0 : index
    %c0_13 = arith.constant 0 : index
    %c0_14 = arith.constant 0 : index
    %20 = vector.load %arg6[%c0_11, %c0_12, %c0_13, %c0_14] : memref<1x4x8x8xbf16, #tpu.memory_space<vmem>>, vector<1x1x8x8xbf16>
    %21 = vector.shape_cast %20 : vector<1x1x8x8xbf16> to vector<8x8xbf16>
    %22 = vector.shape_cast %19 : vector<8x8xbf16> to vector<1x1x8x8xbf16>
    tpu.vector_store %arg6[%c0_11, %c0_12, %c0_13, %c0_14], %22 {strides = array<i32>} : memref<1x4x8x8xbf16, #tpu.memory_space<vmem>>, vector<1x1x8x8xbf16>,
    %23 = vector.extract_strided_slice %12 {offsets = [0, 0], sizes = [8, 8], strides = [1, 1]} : vector<8x32xf32> to vector<8x8xf32>
    %24 = arith.truncf %23 : vector<8x8xf32> to vector<8x8xbf16>
    %c0_15 = arith.constant 0 : index
    %c0_16 = arith.constant 0 : index
    %c0_17 = arith.constant 0 : index
    %c0_18 = arith.constant 0 : index
    %25 = vector.load %arg7[%c0_15, %c0_16, %c0_17, %c0_18] : memref<1x4x8x8xbf16, #tpu.memory_space<vmem>>, vector<1x1x8x8xbf16>
    %26 = vector.shape_cast %25 : vector<1x1x8x8xbf16> to vector<8x8xbf16>
    %27 = vector.shape_cast %24 : vector<8x8xbf16> to vector<1x1x8x8xbf16>
    tpu.vector_store %arg7[%c0_15, %c0_16, %c0_17, %c0_18], %27 {strides = array<i32>} : memref<1x4x8x8xbf16, #tpu.memory_space<vmem>>, vector<1x1x8x8xbf16>,
    %28 = vector.extract_strided_slice %9 {offsets = [0, 8], sizes = [8, 8], strides = [1, 1]} : vector<8x32xf32> to vector<8x8xf32>
    %29 = arith.truncf %28 : vector<8x8xf32> to vector<8x8xbf16>
    %c0_19 = arith.constant 0 : index
    %c1 = arith.constant 1 : index
    %c0_20 = arith.constant 0 : index
    %c0_21 = arith.constant 0 : index
    %30 = vector.load %arg5[%c0_19, %c1, %c0_20, %c0_21] : memref<1x4x8x8xbf16, #tpu.memory_space<vmem>>, vector<1x1x8x8xbf16>
    %31 = vector.shape_cast %30 : vector<1x1x8x8xbf16> to vector<8x8xbf16>
    %32 = vector.shape_cast %29 : vector<8x8xbf16> to vector<1x1x8x8xbf16>
    tpu.vector_store %arg5[%c0_19, %c1, %c0_20, %c0_21], %32 {strides = array<i32>} : memref<1x4x8x8xbf16, #tpu.memory_space<vmem>>, vector<1x1x8x8xbf16>,
    %33 = vector.extract_strided_slice %11 {offsets = [8, 0], sizes = [8, 8], strides = [1, 1]} : vector<32x8xf32> to vector<8x8xf32>
    %34 = arith.truncf %33 : vector<8x8xf32> to vector<8x8xbf16>
    %c0_22 = arith.constant 0 : index
    %c1_23 = arith.constant 1 : index
    %c0_24 = arith.constant 0 : index
    %c0_25 = arith.constant 0 : index
    %35 = vector.load %arg6[%c0_22, %c1_23, %c0_24, %c0_25] : memref<1x4x8x8xbf16, #tpu.memory_space<vmem>>, vector<1x1x8x8xbf16>
    %36 = vector.shape_cast %35 : vector<1x1x8x8xbf16> to vector<8x8xbf16>
    %37 = vector.shape_cast %34 : vector<8x8xbf16> to vector<1x1x8x8xbf16>
    tpu.vector_store %arg6[%c0_22, %c1_23, %c0_24, %c0_25], %37 {strides = array<i32>} : memref<1x4x8x8xbf16, #tpu.memory_space<vmem>>, vector<1x1x8x8xbf16>,
    %38 = vector.extract_strided_slice %12 {offsets = [0, 8], sizes = [8, 8], strides = [1, 1]} : vector<8x32xf32> to vector<8x8xf32>
    %39 = arith.truncf %38 : vector<8x8xf32> to vector<8x8xbf16>
    %c0_26 = arith.constant 0 : index
    %c1_27 = arith.constant 1 : index
    %c0_28 = arith.constant 0 : index
    %c0_29 = arith.constant 0 : index
    %40 = vector.load %arg7[%c0_26, %c1_27, %c0_28, %c0_29] : memref<1x4x8x8xbf16, #tpu.memory_space<vmem>>, vector<1x1x8x8xbf16>
    %41 = vector.shape_cast %40 : vector<1x1x8x8xbf16> to vector<8x8xbf16>
    %42 = vector.shape_cast %39 : vector<8x8xbf16> to vector<1x1x8x8xbf16>
    tpu.vector_store %arg7[%c0_26, %c1_27, %c0_28, %c0_29], %42 {strides = array<i32>} : memref<1x4x8x8xbf16, #tpu.memory_space<vmem>>, vector<1x1x8x8xbf16>,
    %43 = vector.extract_strided_slice %9 {offsets = [0, 16], sizes = [8, 8], strides = [1, 1]} : vector<8x32xf32> to vector<8x8xf32>
    %44 = arith.truncf %43 : vector<8x8xf32> to vector<8x8xbf16>
    %c0_30 = arith.constant 0 : index
    %c2 = arith.constant 2 : index
    %c0_31 = arith.constant 0 : index
    %c0_32 = arith.constant 0 : index
    %45 = vector.load %arg5[%c0_30, %c2, %c0_31, %c0_32] : memref<1x4x8x8xbf16, #tpu.memory_space<vmem>>, vector<1x1x8x8xbf16>
    %46 = vector.shape_cast %45 : vector<1x1x8x8xbf16> to vector<8x8xbf16>
    %47 = vector.shape_cast %44 : vector<8x8xbf16> to vector<1x1x8x8xbf16>
    tpu.vector_store %arg5[%c0_30, %c2, %c0_31, %c0_32], %47 {strides = array<i32>} : memref<1x4x8x8xbf16, #tpu.memory_space<vmem>>, vector<1x1x8x8xbf16>,
    %48 = vector.extract_strided_slice %11 {offsets = [16, 0], sizes = [8, 8], strides = [1, 1]} : vector<32x8xf32> to vector<8x8xf32>
    %49 = arith.truncf %48 : vector<8x8xf32> to vector<8x8xbf16>
    %c0_33 = arith.constant 0 : index
    %c2_34 = arith.constant 2 : index
    %c0_35 = arith.constant 0 : index
    %c0_36 = arith.constant 0 : index
    %50 = vector.load %arg6[%c0_33, %c2_34, %c0_35, %c0_36] : memref<1x4x8x8xbf16, #tpu.memory_space<vmem>>, vector<1x1x8x8xbf16>
    %51 = vector.shape_cast %50 : vector<1x1x8x8xbf16> to vector<8x8xbf16>
    %52 = vector.shape_cast %49 : vector<8x8xbf16> to vector<1x1x8x8xbf16>
    tpu.vector_store %arg6[%c0_33, %c2_34, %c0_35, %c0_36], %52 {strides = array<i32>} : memref<1x4x8x8xbf16, #tpu.memory_space<vmem>>, vector<1x1x8x8xbf16>,
    %53 = vector.extract_strided_slice %12 {offsets = [0, 16], sizes = [8, 8], strides = [1, 1]} : vector<8x32xf32> to vector<8x8xf32>
    %54 = arith.truncf %53 : vector<8x8xf32> to vector<8x8xbf16>
    %c0_37 = arith.constant 0 : index
    %c2_38 = arith.constant 2 : index
    %c0_39 = arith.constant 0 : index
    %c0_40 = arith.constant 0 : index
    %55 = vector.load %arg7[%c0_37, %c2_38, %c0_39, %c0_40] : memref<1x4x8x8xbf16, #tpu.memory_space<vmem>>, vector<1x1x8x8xbf16>
    %56 = vector.shape_cast %55 : vector<1x1x8x8xbf16> to vector<8x8xbf16>
    %57 = vector.shape_cast %54 : vector<8x8xbf16> to vector<1x1x8x8xbf16>
    tpu.vector_store %arg7[%c0_37, %c2_38, %c0_39, %c0_40], %57 {strides = array<i32>} : memref<1x4x8x8xbf16, #tpu.memory_space<vmem>>, vector<1x1x8x8xbf16>,
    %58 = vector.extract_strided_slice %9 {offsets = [0, 24], sizes = [8, 8], strides = [1, 1]} : vector<8x32xf32> to vector<8x8xf32>
    %59 = arith.truncf %58 : vector<8x8xf32> to vector<8x8xbf16>
    %c0_41 = arith.constant 0 : index
    %c3 = arith.constant 3 : index
    %c0_42 = arith.constant 0 : index
    %c0_43 = arith.constant 0 : index
    %60 = vector.load %arg5[%c0_41, %c3, %c0_42, %c0_43] : memref<1x4x8x8xbf16, #tpu.memory_space<vmem>>, vector<1x1x8x8xbf16>
    %61 = vector.shape_cast %60 : vector<1x1x8x8xbf16> to vector<8x8xbf16>
    %62 = vector.shape_cast %59 : vector<8x8xbf16> to vector<1x1x8x8xbf16>
    tpu.vector_store %arg5[%c0_41, %c3, %c0_42, %c0_43], %62 {strides = array<i32>} : memref<1x4x8x8xbf16, #tpu.memory_space<vmem>>, vector<1x1x8x8xbf16>,
    %63 = vector.extract_strided_slice %11 {offsets = [24, 0], sizes = [8, 8], strides = [1, 1]} : vector<32x8xf32> to vector<8x8xf32>
    %64 = arith.truncf %63 : vector<8x8xf32> to vector<8x8xbf16>
    %c0_44 = arith.constant 0 : index
    %c3_45 = arith.constant 3 : index
    %c0_46 = arith.constant 0 : index
    %c0_47 = arith.constant 0 : index
    %65 = vector.load %arg6[%c0_44, %c3_45, %c0_46, %c0_47] : memref<1x4x8x8xbf16, #tpu.memory_space<vmem>>, vector<1x1x8x8xbf16>
    %66 = vector.shape_cast %65 : vector<1x1x8x8xbf16> to vector<8x8xbf16>
    %67 = vector.shape_cast %64 : vector<8x8xbf16> to vector<1x1x8x8xbf16>
    tpu.vector_store %arg6[%c0_44, %c3_45, %c0_46, %c0_47], %67 {strides = array<i32>} : memref<1x4x8x8xbf16, #tpu.memory_space<vmem>>, vector<1x1x8x8xbf16>,
    %68 = vector.extract_strided_slice %12 {offsets = [0, 24], sizes = [8, 8], strides = [1, 1]} : vector<8x32xf32> to vector<8x8xf32>
    %69 = arith.truncf %68 : vector<8x8xf32> to vector<8x8xbf16>
    %c0_48 = arith.constant 0 : index
    %c3_49 = arith.constant 3 : index
    %c0_50 = arith.constant 0 : index
    %c0_51 = arith.constant 0 : index
    %70 = vector.load %arg7[%c0_48, %c3_49, %c0_50, %c0_51] : memref<1x4x8x8xbf16, #tpu.memory_space<vmem>>, vector<1x1x8x8xbf16>
    %71 = vector.shape_cast %70 : vector<1x1x8x8xbf16> to vector<8x8xbf16>
    %72 = vector.shape_cast %69 : vector<8x8xbf16> to vector<1x1x8x8xbf16>
    tpu.vector_store %arg7[%c0_48, %c3_49, %c0_50, %c0_51], %72 {strides = array<i32>} : memref<1x4x8x8xbf16, #tpu.memory_space<vmem>>, vector<1x1x8x8xbf16>,
    return
  }
  func.func @transform_0(%arg0: i32, %arg1: i32) -> (i32, i32, i32) {
    %c0_i32 = arith.constant 0 : i32
    %c0_i32_0 = arith.constant 0 : i32
    return %arg0, %arg1, %c0_i32 : i32, i32, i32
  }
  func.func @transform_1(%arg0: i32, %arg1: i32) -> (i32, i32) {
    %c0_i32 = arith.constant 0 : i32
    %c0_i32_0 = arith.constant 0 : i32
    %c0_i32_1 = arith.constant 0 : i32
    return %c0_i32, %c0_i32_0 : i32, i32
  }
  func.func @transform_2(%arg0: i32, %arg1: i32) -> (i32, i32) {
    %c0_i32 = arith.constant 0 : i32
    %c0_i32_0 = arith.constant 0 : i32
    %c0_i32_1 = arith.constant 0 : i32
    return %c0_i32, %c0_i32_0 : i32, i32
  }
  func.func @transform_3(%arg0: i32, %arg1: i32) -> (i32, i32, i32, i32) {
    %c0_i32 = arith.constant 0 : i32
    %c0_i32_0 = arith.constant 0 : i32
    %c0_i32_1 = arith.constant 0 : i32
    return %arg0, %c0_i32, %arg1, %c0_i32_0 : i32, i32, i32, i32
  }
  func.func @transform_4(%arg0: i32, %arg1: i32) -> (i32, i32, i32, i32) {
    %c0_i32 = arith.constant 0 : i32
    %c0_i32_0 = arith.constant 0 : i32
    %c0_i32_1 = arith.constant 0 : i32
    return %arg0, %c0_i32, %c0_i32_0, %arg1 : i32, i32, i32, i32
  }
  func.func @transform_5(%arg0: i32, %arg1: i32) -> (i32, i32, i32, i32) {
    %c0_i32 = arith.constant 0 : i32
    %c0_i32_0 = arith.constant 0 : i32
    %c0_i32_1 = arith.constant 0 : i32
    return %arg0, %c0_i32, %arg1, %c0_i32_0 : i32, i32, i32, i32
  }
}

</mosaic_0001>

<bundles_post_ra>
// kernel: tpu_custom_call.1
= control target key start
LH: loop header
LB: loop body
LE: loop exit
PB: predicated region body
PF: predicated region fallthrough
CT: control target
= control target key end

     0   :  { %11 = vsyncpa [#allocation3], 0  ;;  %s1407_s0 = inlined_call_operand.hbm [shape: bf16[2,8,32], index: 0, kind: input, shape index: {}]   ;;  %s1408_s1 = inlined_call_operand.hbm [shape: bf16[32,96], index: 1, kind: input, shape index: {}]   ;;  %s1409_s2 = inlined_call_operand.vmem [shape: f32[1,96], index: 2, kind: input, shape index: {}]   ;;  %s1410_s3 = inlined_call_operand.hbm [shape: bf16[2,4,8,8], index: 3, kind: output, shape index: {0}]   ;;  %s1411_s4 = inlined_call_operand.hbm [shape: bf16[2,4,8,8], index: 4, kind: output, shape index: {1}]   ;;  %s1412_s5 = inlined_call_operand.hbm [shape: bf16[2,4,8,8], index: 5, kind: output, shape index: {2}]  }
   0x1   :  { %13 = vsyncpa [#allocation3 + $0x1], 0 }
   0x2   :  { %14 = vsyncpa [#allocation6], 0 }
   0x3   :  { %15 = vsyncpa [#allocation4], 0 }
   0x4   :  { %17 = vsyncpa [#allocation4 + $0x1], 0 }
   0x5   :  { %18 = vsyncpa [#allocation9], 0 }
   0x6   :  { %20 = vsyncpa [#allocation9 + $0x1], 0  ;;  %s1080_s18 = smov 0   ;;  %s1082_s19 = smov 0  }
   0x7   :  { %s1084_s20 = smov 0   ;;  %s1086_s21 = smov 0  }
   0x8   :  { %s1088_s22 = smov 0   ;;  %s1090_s23 = smov 0  }
   0x9 LB: > { %s1111_s24 = sadd.s32 4294967295, %s1030_s23   ;;  %s1416_s25 = sadd.s32 4294967294, %s1030_s23   ;;  %s1030_s23 = sphi %s1090_s23, %s26_s23   ;;  %s1026_s22 = sphi %s1088_s22, %s1437_s22   ;;  %s1022_s21 = sphi %s1086_s21, %s1436_s21   ;;  %s1018_s20 = sphi %s1084_s20, %s1435_s20   ;;  %s1014_s19 = sphi %s1082_s19, %s1434_s19   ;;  %s1010_s18 = sphi %s1080_s18, %s1433_s18  }
   0xa   : > { %p60_p0 = scmp.ne.s32.totalorder %s1014_s19, %s1010_s18  ;;  %p1413_p1 = scmp.eq.s32.totalorder %s1111_s24, 0 }
   0xb   : > { %p134_p3 = scmp.eq.s32.totalorder %s1416_s25, 1  ;;  %p675_p5 = scmp.ge.s32.totalorder %s1030_s23, 1 }
   0xc   : > { %p1122_p4 = por %p1413_p1, %p60_p0  ;;  %p197_p7 = scmp.lt.s32.totalorder %s1030_s23, 3 }
   0xd   : > { %p1127_p6 = por %p134_p3, %p60_p0  ;;  %s1032_s29 = smov [#allocation5]  }
   0xe   : > { %s1417_s26 = scalar_select %p1122_p4, 1, 0 }
   0xf   : > { %s1418_s27 = scalar_select %p1127_p6, 1, 0 }
  0x10   : > { %p1132_p8 = pnand %p675_p5, %p197_p7  ;;  %s209_s30 = sshll.u32 %s1032_s29, 4  ;;  %s210_s30 = int_to_ptr.vmem [resolvable:$true] %s209_s30 }
  0x11   : > { %s38_s7 = sadd.s32 1, %s1026_s22  ;;  %s826_s10 = scalar_lea.hbm %s1408_s1, 256 }
  0x12   : > { %s1419_s28 = scalar_select %p1132_p8, 1, 0 }
  0x13   : > { %p740_p9 = pneg %p1132_p8  ;;  %p827_p12 = scmp.ne.s32.totalorder %s1408_s1, %s826_s10 }
  0x14   : > { %p833_p5 = scmp.lt.u32.totalorder %s826_s10, %s1408_s1 }
  0x15   : > { %p1141_p11 = pnand %p740_p9, %p1413_p1 }
  0x17   : > { %p828_p13 = pneg %p1141_p11 }
  0x19   : > { %p829_p0 = pnand %p828_p13, %p827_p12 }
  0x1b   : > { %p830_p3 = pneg %p829_p0 }
  0x1d   : > { %p835_p7 = pnand %p833_p5, %p830_p3 }
  0x1f   : > { %838 = shalt.err (!%p835_p7)
}
  0x20   : > { %s839_s15 = scalar_lea.vmem %s210_s30, 256  ;;  %p847_p2 = scmp.lt.s32.totalorder %s210_s30, %s210_s30 }
  0x21   : > { %p840_p9 = scmp.ne.s32.totalorder %s210_s30, %s839_s15  ;;  %p848_p6 = scmp.lt.s32.totalorder %s839_s15, %s839_s15 }
  0x23   : > { %p842_p10 = pnand %p840_p9, %p828_p13  ;;  %p849_p4 = por %p848_p6, %p847_p2 }
  0x25   : > { %p843_p1 = pneg %p842_p10 }
  0x27   : > { %p850_p8 = pnand %p849_p4, %p843_p1 }
  0x29   : > { %853 = shalt.err (!%p850_p8)
}
  0x2a   : > { %s1033_s16 = smov 64   ;;  %s1034_s17 = smov 4  }
  0x2b   : > { %743 = dma.hbm_to_vmem [thread:$0]  (!%p1141_p11), %s1408_s1, 256, %s210_s30, [#allocation6], %s1033_s16, %s1033_s16, %s1034_s17  }
  0x2c   : > { %p40_p1 = scmp.ge.s32.totalorder %s38_s7, 2  ;;  %s47_s9 = sadd.s32 1, %s1018_s20 }
  0x2d   : > { %p54_p2 = scmp.ne.s32.totalorder %s1018_s20, %s1014_s19  ;;  %p55_p4 = scmp.eq.s32.totalorder %s1030_s23, 0 }
  0x2e   : > { %s1439_s7 = smov (%p40_p1, %s38_s7), 0  ;;  %p1422_p8 = scmp.eq.s32.totalorder %s1111_s24, 1 }
  0x2f   : > { %p1168_p6 = por %p55_p4, %p54_p2  ;;  %s42_s6 = ssub.s32 %s1026_s22, %s1439_s7 }
  0x30   : > { %p1174_p10 = por %p1422_p8, %p54_p2  ;;  %p759_p12 = scmp.lt.s32.totalorder %s1030_s23, 2 }
  0x31   : > { %p45_p11 = scmp.eq.s32.totalorder %s42_s6, 0  ;;  %s226_s30 = sand.u32 1, %s1018_s20  }
  0x32   : > { %s678_s12 = sshll.u32 %s226_s30, 2  ;;  %s679_s14 = sshll.u32 %s1026_s22, 6 }
  0x33   : > { %s1183_s13 = scalar_select %p45_p11, %s1018_s20, %s47_s9  }
  0x34   : > { %s1189_s17 = scalar_lea.hbm %s1407_s0, %s679_s14  ;;  %s230_s29 = scalar_lea.vmem [#allocation2], %s678_s12 }
  0x35   : > { %s238_s8 = sshll.u32 %s230_s29, 4  ;;  %p1195_p13 = pnand %p759_p12, %p1168_p6  ;;  %s1191_s8 = int_to_ptr.vmem [resolvable:$true] %s238_s8 }
  0x36   : > { %s227_s9 = scalar_lea.sflag [#allocation3], %s226_s30  ;;  %s854_s25 = scalar_lea.hbm %s1189_s17, 64 }
  0x37   : > { %p855_p0 = scmp.ne.s32.totalorder %s1189_s17, %s854_s25  ;;  %p856_p3 = pneg %p1195_p13 }
  0x38   : > { %s859_s15 = scalar_lea.hbm %s1407_s0, 128  ;;  %p860_p9 = scmp.lt.u32.totalorder %s1189_s17, %s1407_s0 }
  0x39   : > { %p857_p5 = pnand %p856_p3, %p855_p0  ;;  %p861_p1 = scmp.lt.u32.totalorder %s859_s15, %s854_s25 }
  0x3a   : > { %p863_p4 = scmp.lt.u32.totalorder %s854_s25, %s1189_s17 }
  0x3b   : > { %p858_p7 = pneg %p857_p5  ;;  %p862_p2 = por %p861_p1, %p860_p9 }
  0x3d   : > { %p864_p6 = por %p863_p4, %p862_p2 }
  0x3f   : > { %p865_p8 = pnand %p864_p6, %p858_p7 }
  0x41   : > { %868 = shalt.err (!%p865_p8)
}
  0x42   : > { %s869_s30 = scalar_lea.vmem %s1191_s8, 64  ;;  %s1035_s29 = smov [#allocation2]  }
  0x43   : > { %p870_p12 = scmp.ne.s32.totalorder %s1191_s8, %s869_s30  ;;  %s874_s12 = sshll.u32 %s1035_s29, 4  ;;  %s875_s12 = int_to_ptr.vmem [resolvable:$false] %s874_s12 }
  0x44   : > { %s876_s14 = scalar_lea.vmem %s875_s12, 128  ;;  %p877_p5 = scmp.lt.s32.totalorder %s1191_s8, %s875_s12 }
  0x45   : > { %p872_p11 = pnand %p870_p12, %p856_p3  ;;  %p878_p9 = scmp.lt.s32.totalorder %s876_s14, %s869_s30 }
  0x47   : > { %p873_p0 = pneg %p872_p11  ;;  %p879_p1 = por %p878_p9, %p877_p5 }
  0x49   : > { %p880_p2 = pnand %p879_p1, %p873_p0 }
  0x4b   : > { %883 = shalt.err (!%p880_p2)
}
  0x4c   : > { %747 = dma.hbm_to_vmem [thread:$0]  (!%p1195_p13), %s1189_s17, 64, %s1191_s8, %s227_s9  }
  0x4d   : > { %p1425_p7 = scmp.ne.s32.totalorder %s1419_s28, 0 }
  0x4e   : > { %s1227_s25 = sand.u32 (!%p1425_p7), 1, %s1014_s19   ;;  %p1426_p3 = scmp.ne.s32.totalorder (!%p1425_p7), %s1417_s26, 0 }
  0x4f   : > { %247 = sbr.rel (%p1425_p7) target bundleno = 607 (0x25f), region = 32  ;;  %s681_s15 = sshll.u32 (!%p1425_p7), %s1227_s25, 2 }
  0x50   : > { %s250_s10 = scalar_lea.sflag (!%p1425_p7), [#allocation3], %s1227_s25  ;;  %s253_s16 = scalar_lea.vmem (!%p1425_p7), [#allocation2], %s681_s15 }
  0x56   : > { %993 = dma.done.wait (%p1426_p3), %s250_s10, 64  }
  0x57   : > { %995 = vsyncadd (%p1426_p3), %s250_s10, 4294967232  ;;  %p1427_p4 = scmp.eq.s32.totalorder %s1111_s24, 0 }
  0x59   : > { %997 = dma.done.wait (%p1427_p4), [#allocation6], 256   ;;  %p1428_p13 = pmov %p1427_p4 }
  0x5a   : > { %v1036_v0 = vmov 0.0   ;;  %vm1037_vm0 = vmmov 0   ;;  %v824_v1 = vld [vmem:[#allocation5] sm:$0xff]   ;;  %v825_v2 = vld [vmem:[#allocation5 + $0x8] sm:$0xff]   ;;  %v295_v3 = vld [vmem:[%s253_s16] sm:$0xf] }
  0x5b   : > { %999 = vsyncadd (%p1428_p13), [#allocation6], 4294967040  ;;  %720 = vmatprep.subr.bf16.mxu0 %v1036_v0  ;;  %724 = vmatprep.mubr.msk.bf16.mxu0 %vm1037_vm0, %v1036_v0  ;;  %vm319_vm1 = vcmask 261120   ;;  %v686_v4 = vld [vmem:[%s1409_s2] ss:$0 sm:$0xff]  ;;  %s1243_s17 = sshll.u32 %s1227_s25, 4 }
  0x5c   : > { %721 = vmatpush3.bf16.msra.mxu0 %v824_v1  ;;  %s1038_s8 = smov 96   ;;  %vm401_vm2 = vcmask 60416   ;;  %s1039_s6 = smov 56  }
  0x5d   : > { %722 = vmatprep.subr.bf16.mxu0 %v1036_v0  ;;  %s1040_s9 = smov 64   ;;  %s1247_s30 = scalar_lea.vmem [#allocation7], %s1243_s17 }
  0x5e   : > { %s1041_s29 = smov 48   ;;  %s1042_s12 = smov 112  }
  0x5f   : > { %s1043_s14 = smov 120   ;;  %s1044_s15 = smov 104  }
  0x60   : > { %723 = vmatpush3.bf16.msra.mxu0 %v825_v2  ;;  %s1045_s10 = smov 40   ;;  %s1252_s16 = scalar_lea.vmem [#allocation10], %s1243_s17 }
  0x61   : > { %s480_s26 = sshll.u32 %s1247_s30, 4  ;;  %s1270_s28 = sshll.u32 %s1022_s21, 8  ;;  %s1272_s26 = int_to_ptr.vmem [resolvable:$true] %s480_s26 }
  0x63   : > { %725 = vmatmul.mubr.msk.bf16.vlgmr.msra.gmra.mrb[0].mxu0 %vm319_vm1, %v295_v3 }
 0x136   : > { %v357_v5 = vpop.f32.mrb[0].mxu0 }
 0x137   : > { %v358_v6 = vadd.f32 %v686_v4, %v357_v5  ;;  %v726_v7 = vpop.f32.mrb[1].mxu0 }
 0x138   : > { %v360_v8 = vpop.f32.mrb[2].mxu0 }
 0x139   : > { %v363_v9 = vmul.f32 0.35355338, %v358_v6  ;;  %v712_v10 = vpack.c.bf16 %v358_v6, %v358_v6  ;;  %365 = vrot.lane.b32.xlu0 %v358_v6, %s1038_s8  ;;  %v727_v11 = vpop.f32.mrb[3].mxu0 }
 0x13b   : > { %v400_v12 = vpack.c.bf16 %v363_v9, %v363_v9  ;;  %424 = vrot.lane.b32.xlu1 %v712_v10, %s1039_s6 }
 0x13d   : > { %409 = vrot.lane.b32.xlu0 %v712_v10, %s1040_s9  ;;  %402 = vst.msk [vmem:[%s1247_s30] sm:$0xf] %vm401_vm2, %v400_v12 }
 0x13f   : > { %437 = vrot.lane.b32.xlu1 %v712_v10, %s1041_s29  ;;  %s1278_s29 = scalar_lea.hbm %s1410_s3, %s1270_s28 }
 0x141   : > { %429 = vrot.lane.b32.xlu0 %v400_v12, %s1042_s12 }
 0x143   : > { %416 = vrot.lane.b32.xlu1 %v400_v12, %s1043_s14  ;;  %s884_s14 = scalar_lea.vmem %s1272_s26, 256 }
 0x144   : > { %p885_p6 = scmp.ne.s32.totalorder %s1272_s26, %s884_s14 }
 0x145   : > { %442 = vrot.lane.b32.xlu0 %v400_v12, %s1044_s15 }
 0x146   : > { %p886_p8 = pnand %p885_p6, %p1174_p10 }
 0x147   : > { %450 = vrot.lane.b32.xlu1 %v712_v10, %s1045_s10 }
 0x148   : > { %p887_p12 = pneg %p886_p8 }
 0x1ab   : > { %v366_v13 = vpop.permute.xlu0 %365 }
 0x1ac   : > { %368 = vxpose.xlu0.b32.start.end [1/1] (short) (narrow) %v366_v13, 32 }
 0x1ad   : > { %v425_v14 = vpop.permute.xlu1 %424 }
 0x1ae   : > { %694 = vst.msk [vmem:[%s1252_s16 + $0x4] sm:$0xf] %vm401_vm2, %v425_v14 }
 0x1af   : > { %v410_v15 = vpop.permute.xlu0 %409 }
 0x1b0   : > { %412 = vst.msk [vmem:[%s1252_s16] sm:$0xf] %vm401_vm2, %v410_v15 }
 0x1b1   : > { %v438_v16 = vpop.permute.xlu1 %437 }
 0x1b2   : > { %697 = vst.msk [vmem:[%s1252_s16 + $0x8] sm:$0xf] %vm401_vm2, %v438_v16 }
 0x1b3   : > { %v430_v17 = vpop.permute.xlu0 %429 }
 0x1b4   : > { %695 = vst.msk [vmem:[%s1247_s30 + $0x8] sm:$0xf] %vm401_vm2, %v430_v17 }
 0x1b5   : > { %v417_v18 = vpop.permute.xlu1 %416 }
 0x1b6   : > { %692 = vst.msk [vmem:[%s1247_s30 + $0x4] sm:$0xf] %vm401_vm2, %v417_v18 }
 0x1b7   : > { %v443_v19 = vpop.permute.xlu0 %442 }
 0x1b8   : > { %698 = vst.msk [vmem:[%s1247_s30 + $0xc] sm:$0xf] %vm401_vm2, %v443_v19  ;;  %s1046_s30 = smov [#allocation7]  }
 0x1b9   : > { %v451_v20 = vpop.permute.xlu1 %450  ;;  %s888_s21 = sshll.u32 %s1046_s30, 4  ;;  %s889_s21 = int_to_ptr.vmem [resolvable:$false] %s888_s21 }
 0x1ba   : > { %700 = vst.msk [vmem:[%s1252_s16 + $0xc] sm:$0xf] %vm401_vm2, %v451_v20  ;;  %s890_s15 = scalar_lea.vmem %s889_s21, 512  ;;  %p891_p11 = scmp.lt.s32.totalorder %s1272_s26, %s889_s21 }
 0x1bb   : > { %p892_p0 = scmp.lt.s32.totalorder %s890_s15, %s884_s14 }
 0x1bd   : > { %p893_p5 = por %p892_p0, %p891_p11 }
 0x1bf   : > { %p894_p9 = pnand %p893_p5, %p887_p12 }
 0x1c1   : > { %897 = shalt.err (!%p894_p9)
}
 0x1c2   : > { %s898_s10 = scalar_lea.hbm %s1278_s29, 256  ;;  %s902_s30 = scalar_lea.hbm %s1410_s3, 512 }
 0x1c3   : > { %p899_p1 = scmp.ne.s32.totalorder %s1278_s29, %s898_s10  ;;  %p903_p3 = scmp.lt.u32.totalorder %s1278_s29, %s1410_s3 }
 0x1c4   : > { %p904_p4 = scmp.lt.u32.totalorder %s902_s30, %s898_s10  ;;  %p906_p6 = scmp.lt.u32.totalorder %s898_s10, %s1278_s29 }
 0x1c5   : > { %p900_p2 = pnand %p899_p1, %p1174_p10 }
 0x1c6   : > { %p905_p13 = por %p904_p4, %p903_p3 }
 0x1c7   : > { %p901_p7 = pneg %p900_p2 }
 0x1c8   : > { %p907_p8 = por %p906_p6, %p905_p13 }
 0x1ca   : > { %p908_p12 = pnand %p907_p8, %p901_p7 }
 0x1cc   : > { %911 = shalt.err (!%p908_p12)
}
 0x1cd   : > { %s1047_s14 = smov 4   ;;  %s1429_s15 = scalar_lea.sflag [#allocation4], %s1227_s25 }
 0x1ce   : > { %734 = dma.vmem_to_hbm [thread:$0]  (%p1174_p10), %s1272_s26, 256, %s1278_s29, %s1429_s15, %s1040_s9, %s1040_s9, %s1047_s14  }
 0x1cf   : > { %s286_s12 = scalar_lea.vmem [#allocation8], %s1243_s17  ;;  %s460_s10 = sand.u32 1, %s1111_s24  }
 0x1d0   : > { %s497_s25 = sshll.u32 %s286_s12, 4  ;;  %s514_s8 = sshll.u32 %s1252_s16, 4  ;;  %s1313_s25 = int_to_ptr.vmem [resolvable:$true] %s497_s25  ;;  %s1321_s8 = int_to_ptr.vmem [resolvable:$true] %s514_s8 }
 0x1d1   : > { %s1319_s29 = scalar_lea.hbm %s1411_s4, %s1270_s28  ;;  %s1327_s24 = scalar_lea.hbm %s1412_s5, %s1270_s28 }
 0x1d2   : > { %s1330_s16 = scalar_lea.sflag [#allocation9], %s460_s10  ;;  %s912_s21 = scalar_lea.vmem %s1313_s25, 256 }
 0x1d3   : > { %p913_p11 = scmp.ne.s32.totalorder %s1313_s25, %s912_s21  ;;  %s1048_s15 = smov [#allocation8]  }
 0x1d4   : > { %s916_s17 = sshll.u32 %s1048_s15, 4  ;;  %s917_s17 = int_to_ptr.vmem [resolvable:$false] %s916_s17 }
 0x1d5   : > { %p914_p0 = pnand %p913_p11, %p1174_p10  ;;  %s918_s26 = scalar_lea.vmem %s917_s17, 512 }
 0x1d6   : > { %p919_p9 = scmp.lt.s32.totalorder %s1313_s25, %s917_s17  ;;  %p920_p1 = scmp.lt.s32.totalorder %s918_s26, %s912_s21 }
 0x1d7   : > { %p915_p5 = pneg %p914_p0 }
 0x1d8   : > { %p921_p2 = por %p920_p1, %p919_p9 }
 0x1da   : > { %p922_p7 = pnand %p921_p2, %p915_p5 }
 0x22c   : > { %v384_v21 = vpop.trf.xlu0 }
 0x22d   : > { %v403_v22 = vpack.c.bf16 %v384_v21, %v384_v21 }
 0x22f   : > { %404 = vst.msk [vmem:[%s286_s12] sm:$0xf] %vm401_vm2, %v403_v22 }
 0x230   : > { %v385_v23 = vpop.trf.xlu0 }
 0x231   : > { %v421_v24 = vpack.c.bf16 %v385_v23, %v385_v23 }
 0x233   : > { %693 = vst.msk [vmem:[%s286_s12 + $0x4] sm:$0xf] %vm401_vm2, %v421_v24 }
 0x234   : > { %v386_v25 = vpop.trf.xlu0 }
 0x235   : > { %v434_v26 = vpack.c.bf16 %v386_v25, %v386_v25 }
 0x237   : > { %696 = vst.msk [vmem:[%s286_s12 + $0x8] sm:$0xf] %vm401_vm2, %v434_v26 }
 0x238   : > { %v387_v27 = vpop.trf.xlu0 }
 0x239   : > { %v447_v28 = vpack.c.bf16 %v387_v27, %v387_v27 }
 0x23b   : > { %699 = vst.msk [vmem:[%s286_s12 + $0xc] sm:$0xf] %vm401_vm2, %v447_v28 }
 0x23c   : > { %925 = shalt.err (!%p922_p7)
}
 0x23d   : > { %s926_s28 = scalar_lea.hbm %s1319_s29, 256  ;;  %s930_s6 = scalar_lea.hbm %s1411_s4, 512 }
 0x23e   : > { %p927_p3 = scmp.ne.s32.totalorder %s1319_s29, %s926_s28  ;;  %p931_p6 = scmp.lt.u32.totalorder %s1319_s29, %s1411_s4 }
 0x23f   : > { %p932_p8 = scmp.lt.u32.totalorder %s930_s6, %s926_s28  ;;  %p934_p11 = scmp.lt.u32.totalorder %s926_s28, %s1319_s29 }
 0x240   : > { %p928_p4 = pnand %p927_p3, %p1174_p10 }
 0x241   : > { %p933_p12 = por %p932_p8, %p931_p6 }
 0x242   : > { %p929_p13 = pneg %p928_p4 }
 0x243   : > { %p935_p0 = por %p934_p11, %p933_p12 }
 0x245   : > { %p936_p5 = pnand %p935_p0, %p929_p13 }
 0x247   : > { %939 = shalt.err (!%p936_p5)
}
 0x248   : > { %735 = dma.vmem_to_hbm [thread:$0]  (%p1174_p10), %s1313_s25, 256, %s1319_s29, %s1330_s16, %s1040_s9, %s1040_s9, %s1047_s14  }
 0x249   : > { %s940_s21 = scalar_lea.vmem %s1321_s8, 256  ;;  %s1049_s17 = smov [#allocation10]  }
 0x24a   : > { %p941_p9 = scmp.ne.s32.totalorder %s1321_s8, %s940_s21  ;;  %s944_s26 = sshll.u32 %s1049_s17, 4  ;;  %s945_s26 = int_to_ptr.vmem [resolvable:$false] %s944_s26 }
 0x24b   : > { %s946_s28 = scalar_lea.vmem %s945_s26, 512  ;;  %p947_p7 = scmp.lt.s32.totalorder %s1321_s8, %s945_s26 }
 0x24c   : > { %p942_p1 = pnand %p941_p9, %p1174_p10  ;;  %p948_p3 = scmp.lt.s32.totalorder %s946_s28, %s940_s21 }
 0x24e   : > { %p943_p2 = pneg %p942_p1  ;;  %p949_p4 = por %p948_p3, %p947_p7 }
 0x250   : > { %p950_p13 = pnand %p949_p4, %p943_p2 }
 0x252   : > { %953 = shalt.err (!%p950_p13)
}
 0x253   : > { %s954_s25 = scalar_lea.hbm %s1327_s24, 256  ;;  %s958_s10 = scalar_lea.hbm %s1412_s5, 512 }
 0x254   : > { %p955_p6 = scmp.ne.s32.totalorder %s1327_s24, %s954_s25  ;;  %p959_p11 = scmp.lt.u32.totalorder %s1327_s24, %s1412_s5 }
 0x255   : > { %p960_p0 = scmp.lt.u32.totalorder %s958_s10, %s954_s25  ;;  %p962_p9 = scmp.lt.u32.totalorder %s954_s25, %s1327_s24 }
 0x256   : > { %p956_p8 = pnand %p955_p6, %p1174_p10 }
 0x257   : > { %p961_p5 = por %p960_p0, %p959_p11 }
 0x258   : > { %p957_p12 = pneg %p956_p8 }
 0x259   : > { %p963_p1 = por %p962_p9, %p961_p5 }
 0x25b   : > { %p964_p2 = pnand %p963_p1, %p957_p12 }
 0x25d   : > { %967 = shalt.err (!%p964_p2)
}
 0x25e   : > { %736 = dma.vmem_to_hbm [thread:$0]  (%p1174_p10), %s1321_s8, 256, %s1327_s24, %s1330_s16, %s1040_s9, %s1040_s9, %s1047_s14  }
 0x25f PF: > { %s529_s15 = sand.u32 1, %s1010_s18   ;;  %p1430_p7 = scmp.ne.s32.totalorder %s1418_s27, 0 }
 0x260   : > { %p1431_p3 = scmp.ge.s32.totalorder %s1030_s23, 2  ;;  %s530_s21 = scalar_lea.sflag [#allocation4], %s529_s15 }
 0x262   : > { %p749_p4 = pnand %p1431_p3, %p1430_p7 }
 0x264   : > { %1001 = dma.done.wait (!%p749_p4), %s530_s21, 256  }
 0x265   : > { %1003 = vsyncadd (!%p749_p4), %s530_s21, 4294967040  ;;  %s1432_s11 = sadd.s32 4294967294, %s1030_s23  }
 0x266   : > { %s538_s17 = sand.u32 1, %s1432_s11  }
 0x267   : > { %s539_s26 = scalar_lea.sflag [#allocation9], %s538_s17 }
 0x268   : > { %1005 = dma.done.wait (!%p749_p4), %s539_s26, 512  }
 0x269   : > { %1007 = vsyncadd (!%p749_p4), %s539_s26, 4294966784  ;;  %s26_s23 = sadd.s32 1, %s1030_s23   ;;  %s1433_s18 = smov %s1014_s19 }
 0x26a   : > { %p23_p10 = scmp.ge.s32.totalorder %s26_s23, 4   ;;  %s1434_s19 = smov %s1018_s20 }
 0x26b   : > { %s1435_s20 = smov %s1183_s13  ;;  %s1436_s21 = smov %s1026_s22 }
 0x26c   : > { %s1437_s22 = smov %s1439_s7  ;;  %25 = sbr.rel (!%p23_p10) target bundleno = 9 (0x9), region = 122 }
 0x273   :  { %553 = vsyncpa [#allocation3], 1 }
 0x274   :  { %555 = vsyncpa [#allocation3 + $0x1], 1 }
 0x275   :  { %556 = vsyncpa [#allocation6], 1 }
 0x276   :  { %557 = vsyncpa [#allocation4], 1 }
 0x277   :  { %559 = vsyncpa [#allocation4 + $0x1], 1 }
 0x278   :  { %560 = vsyncpa [#allocation9], 1 }
 0x279   :  { %562 = vsyncpa [#allocation9 + $0x1], 1 }

// kernel: tpu_custom_call.1
= control target key start
LH: loop header
LB: loop body
LE: loop exit
PB: predicated region body
PF: predicated region fallthrough
CT: control target
= control target key end

     0   :  { %11 = vsyncpa [#allocation3], 0  ;;  %s1407_s0 = inlined_call_operand.hbm [shape: bf16[2,8,32], index: 0, kind: input, shape index: {}]   ;;  %s1408_s1 = inlined_call_operand.hbm [shape: bf16[32,96], index: 1, kind: input, shape index: {}]   ;;  %s1409_s2 = inlined_call_operand.vmem [shape: f32[1,96], index: 2, kind: input, shape index: {}]   ;;  %s1410_s3 = inlined_call_operand.hbm [shape: bf16[2,4,8,8], index: 3, kind: output, shape index: {0}]   ;;  %s1411_s4 = inlined_call_operand.hbm [shape: bf16[2,4,8,8], index: 4, kind: output, shape index: {1}]   ;;  %s1412_s5 = inlined_call_operand.hbm [shape: bf16[2,4,8,8], index: 5, kind: output, shape index: {2}]  }
   0x1   :  { %13 = vsyncpa [#allocation3 + $0x1], 0 }
   0x2   :  { %14 = vsyncpa [#allocation6], 0 }
   0x3   :  { %15 = vsyncpa [#allocation4], 0 }
   0x4   :  { %17 = vsyncpa [#allocation4 + $0x1], 0 }
   0x5   :  { %18 = vsyncpa [#allocation9], 0 }
   0x6   :  { %20 = vsyncpa [#allocation9 + $0x1], 0  ;;  %s1080_s18 = smov 0   ;;  %s1082_s19 = smov 0  }
   0x7   :  { %s1084_s20 = smov 0   ;;  %s1086_s21 = smov 0  }
   0x8   :  { %s1088_s22 = smov 0   ;;  %s1090_s23 = smov 0  }
   0x9 LB: > { %s1111_s24 = sadd.s32 4294967295, %s1030_s23   ;;  %s1416_s25 = sadd.s32 4294967294, %s1030_s23   ;;  %s1030_s23 = sphi %s1090_s23, %s26_s23   ;;  %s1026_s22 = sphi %s1088_s22, %s1437_s22   ;;  %s1022_s21 = sphi %s1086_s21, %s1436_s21   ;;  %s1018_s20 = sphi %s1084_s20, %s1435_s20   ;;  %s1014_s19 = sphi %s1082_s19, %s1434_s19   ;;  %s1010_s18 = sphi %s1080_s18, %s1433_s18  }
   0xa   : > { %p60_p0 = scmp.ne.s32.totalorder %s1014_s19, %s1010_s18  ;;  %p1413_p1 = scmp.eq.s32.totalorder %s1111_s24, 0 }
   0xb   : > { %p134_p3 = scmp.eq.s32.totalorder %s1416_s25, 1  ;;  %p675_p5 = scmp.ge.s32.totalorder %s1030_s23, 1 }
   0xc   : > { %p1122_p4 = por %p1413_p1, %p60_p0  ;;  %p197_p7 = scmp.lt.s32.totalorder %s1030_s23, 3 }
   0xd   : > { %p1127_p6 = por %p134_p3, %p60_p0  ;;  %s1032_s29 = smov [#allocation5]  }
   0xe   : > { %s1417_s26 = scalar_select %p1122_p4, 1, 0 }
   0xf   : > { %s1418_s27 = scalar_select %p1127_p6, 1, 0 }
  0x10   : > { %p1132_p8 = pnand %p675_p5, %p197_p7  ;;  %s209_s30 = sshll.u32 %s1032_s29, 4  ;;  %s210_s30 = int_to_ptr.vmem [resolvable:$true] %s209_s30 }
  0x11   : > { %s38_s7 = sadd.s32 1, %s1026_s22  ;;  %s826_s10 = scalar_lea.hbm %s1408_s1, 256 }
  0x12   : > { %s1419_s28 = scalar_select %p1132_p8, 1, 0 }
  0x13   : > { %p740_p9 = pneg %p1132_p8  ;;  %p827_p12 = scmp.ne.s32.totalorder %s1408_s1, %s826_s10 }
  0x14   : > { %p833_p5 = scmp.lt.u32.totalorder %s826_s10, %s1408_s1 }
  0x15   : > { %p1141_p11 = pnand %p740_p9, %p1413_p1 }
  0x17   : > { %p828_p13 = pneg %p1141_p11 }
  0x19   : > { %p829_p0 = pnand %p828_p13, %p827_p12 }
  0x1b   : > { %p830_p3 = pneg %p829_p0 }
  0x1d   : > { %p835_p7 = pnand %p833_p5, %p830_p3 }
  0x1f   : > { %838 = shalt.err (!%p835_p7)
}
  0x20   : > { %s839_s15 = scalar_lea.vmem %s210_s30, 256  ;;  %p847_p2 = scmp.lt.s32.totalorder %s210_s30, %s210_s30 }
  0x21   : > { %p840_p9 = scmp.ne.s32.totalorder %s210_s30, %s839_s15  ;;  %p848_p6 = scmp.lt.s32.totalorder %s839_s15, %s839_s15 }
  0x23   : > { %p842_p10 = pnand %p840_p9, %p828_p13  ;;  %p849_p4 = por %p848_p6, %p847_p2 }
  0x25   : > { %p843_p1 = pneg %p842_p10 }
  0x27   : > { %p850_p8 = pnand %p849_p4, %p843_p1 }
  0x29   : > { %853 = shalt.err (!%p850_p8)
}
  0x2a   : > { %s1033_s16 = smov 64   ;;  %s1034_s17 = smov 4  }
  0x2b   : > { %743 = dma.hbm_to_vmem [thread:$0]  (!%p1141_p11), %s1408_s1, 256, %s210_s30, [#allocation6], %s1033_s16, %s1033_s16, %s1034_s17  }
  0x2c   : > { %p40_p1 = scmp.ge.s32.totalorder %s38_s7, 2  ;;  %s47_s9 = sadd.s32 1, %s1018_s20 }
  0x2d   : > { %p54_p2 = scmp.ne.s32.totalorder %s1018_s20, %s1014_s19  ;;  %p55_p4 = scmp.eq.s32.totalorder %s1030_s23, 0 }
  0x2e   : > { %s1439_s7 = smov (%p40_p1, %s38_s7), 0  ;;  %p1422_p8 = scmp.eq.s32.totalorder %s1111_s24, 1 }
  0x2f   : > { %p1168_p6 = por %p55_p4, %p54_p2  ;;  %s42_s6 = ssub.s32 %s1026_s22, %s1439_s7 }
  0x30   : > { %p1174_p10 = por %p1422_p8, %p54_p2  ;;  %p759_p12 = scmp.lt.s32.totalorder %s1030_s23, 2 }
  0x31   : > { %p45_p11 = scmp.eq.s32.totalorder %s42_s6, 0  ;;  %s226_s30 = sand.u32 1, %s1018_s20  }
  0x32   : > { %s678_s12 = sshll.u32 %s226_s30, 2  ;;  %s679_s14 = sshll.u32 %s1026_s22, 6 }
  0x33   : > { %s1183_s13 = scalar_select %p45_p11, %s1018_s20, %s47_s9  }
  0x34   : > { %s1189_s17 = scalar_lea.hbm %s1407_s0, %s679_s14  ;;  %s230_s29 = scalar_lea.vmem [#allocation2], %s678_s12 }
  0x35   : > { %s238_s8 = sshll.u32 %s230_s29, 4  ;;  %p1195_p13 = pnand %p759_p12, %p1168_p6  ;;  %s1191_s8 = int_to_ptr.vmem [resolvable:$true] %s238_s8 }
  0x36   : > { %s227_s9 = scalar_lea.sflag [#allocation3], %s226_s30  ;;  %s854_s25 = scalar_lea.hbm %s1189_s17, 64 }
  0x37   : > { %p855_p0 = scmp.ne.s32.totalorder %s1189_s17, %s854_s25  ;;  %p856_p3 = pneg %p1195_p13 }
  0x38   : > { %s859_s15 = scalar_lea.hbm %s1407_s0, 128  ;;  %p860_p9 = scmp.lt.u32.totalorder %s1189_s17, %s1407_s0 }
  0x39   : > { %p857_p5 = pnand %p856_p3, %p855_p0  ;;  %p861_p1 = scmp.lt.u32.totalorder %s859_s15, %s854_s25 }
  0x3a   : > { %p863_p4 = scmp.lt.u32.totalorder %s854_s25, %s1189_s17 }
  0x3b   : > { %p858_p7 = pneg %p857_p5  ;;  %p862_p2 = por %p861_p1, %p860_p9 }
  0x3d   : > { %p864_p6 = por %p863_p4, %p862_p2 }
  0x3f   : > { %p865_p8 = pnand %p864_p6, %p858_p7 }
  0x41   : > { %868 = shalt.err (!%p865_p8)
}
  0x42   : > { %s869_s30 = scalar_lea.vmem %s1191_s8, 64  ;;  %s1035_s29 = smov [#allocation2]  }
  0x43   : > { %p870_p12 = scmp.ne.s32.totalorder %s1191_s8, %s869_s30  ;;  %s874_s12 = sshll.u32 %s1035_s29, 4  ;;  %s875_s12 = int_to_ptr.vmem [resolvable:$false] %s874_s12 }
  0x44   : > { %s876_s14 = scalar_lea.vmem %s875_s12, 128  ;;  %p877_p5 = scmp.lt.s32.totalorder %s1191_s8, %s875_s12 }
  0x45   : > { %p872_p11 = pnand %p870_p12, %p856_p3  ;;  %p878_p9 = scmp.lt.s32.totalorder %s876_s14, %s869_s30 }
  0x47   : > { %p873_p0 = pneg %p872_p11  ;;  %p879_p1 = por %p878_p9, %p877_p5 }
  0x49   : > { %p880_p2 = pnand %p879_p1, %p873_p0 }
  0x4b   : > { %883 = shalt.err (!%p880_p2)
}
  0x4c   : > { %747 = dma.hbm_to_vmem [thread:$0]  (!%p1195_p13), %s1189_s17, 64, %s1191_s8, %s227_s9  }
  0x4d   : > { %p1425_p7 = scmp.ne.s32.totalorder %s1419_s28, 0 }
  0x4e   : > { %s1227_s25 = sand.u32 (!%p1425_p7), 1, %s1014_s19   ;;  %p1426_p3 = scmp.ne.s32.totalorder (!%p1425_p7), %s1417_s26, 0 }
  0x4f   : > { %247 = sbr.rel (%p1425_p7) target bundleno = 607 (0x25f), region = 32  ;;  %s681_s15 = sshll.u32 (!%p1425_p7), %s1227_s25, 2 }
  0x50   : > { %s250_s10 = scalar_lea.sflag (!%p1425_p7), [#allocation3], %s1227_s25  ;;  %s253_s16 = scalar_lea.vmem (!%p1425_p7), [#allocation2], %s681_s15 }
  0x56   : > { %993 = dma.done.wait (%p1426_p3), %s250_s10, 64  }
  0x57   : > { %995 = vsyncadd (%p1426_p3), %s250_s10, 4294967232  ;;  %p1427_p4 = scmp.eq.s32.totalorder %s1111_s24, 0 }
  0x59   : > { %997 = dma.done.wait (%p1427_p4), [#allocation6], 256   ;;  %p1428_p13 = pmov %p1427_p4 }
  0x5a   : > { %v1036_v0 = vmov 0.0   ;;  %vm1037_vm0 = vmmov 0   ;;  %v824_v1 = vld [vmem:[#allocation5] sm:$0xff]   ;;  %v825_v2 = vld [vmem:[#allocation5 + $0x8] sm:$0xff]   ;;  %v295_v3 = vld [vmem:[%s253_s16] sm:$0xf] }
  0x5b   : > { %999 = vsyncadd (%p1428_p13), [#allocation6], 4294967040  ;;  %720 = vmatprep.subr.bf16.mxu0 %v1036_v0  ;;  %724 = vmatprep.mubr.msk.bf16.mxu0 %vm1037_vm0, %v1036_v0  ;;  %vm319_vm1 = vcmask 261120   ;;  %v686_v4 = vld [vmem:[%s1409_s2] ss:$0 sm:$0xff]  ;;  %s1243_s17 = sshll.u32 %s1227_s25, 4 }
  0x5c   : > { %721 = vmatpush3.bf16.msra.mxu0 %v824_v1  ;;  %s1038_s8 = smov 96   ;;  %vm401_vm2 = vcmask 60416   ;;  %s1039_s6 = smov 56  }
  0x5d   : > { %722 = vmatprep.subr.bf16.mxu0 %v1036_v0  ;;  %s1040_s9 = smov 64   ;;  %s1247_s30 = scalar_lea.vmem [#allocation7], %s1243_s17 }
  0x5e   : > { %s1041_s29 = smov 48   ;;  %s1042_s12 = smov 112  }
  0x5f   : > { %s1043_s14 = smov 120   ;;  %s1044_s15 = smov 104  }
  0x60   : > { %723 = vmatpush3.bf16.msra.mxu0 %v825_v2  ;;  %s1045_s10 = smov 40   ;;  %s1252_s16 = scalar_lea.vmem [#allocation10], %s1243_s17 }
  0x61   : > { %s480_s26 = sshll.u32 %s1247_s30, 4  ;;  %s1270_s28 = sshll.u32 %s1022_s21, 8  ;;  %s1272_s26 = int_to_ptr.vmem [resolvable:$true] %s480_s26 }
  0x63   : > { %725 = vmatmul.mubr.msk.bf16.vlgmr.msra.gmra.mrb[0].mxu0 %vm319_vm1, %v295_v3 }
 0x136   : > { %v357_v5 = vpop.f32.mrb[0].mxu0 }
 0x137   : > { %v358_v6 = vadd.f32 %v686_v4, %v357_v5  ;;  %v726_v7 = vpop.f32.mrb[1].mxu0 }
 0x138   : > { %v360_v8 = vpop.f32.mrb[2].mxu0 }
 0x139   : > { %v363_v9 = vmul.f32 0.35355338, %v358_v6  ;;  %v712_v10 = vpack.c.bf16 %v358_v6, %v358_v6  ;;  %365 = vrot.lane.b32.xlu0 %v358_v6, %s1038_s8  ;;  %v727_v11 = vpop.f32.mrb[3].mxu0 }
 0x13b   : > { %v400_v12 = vpack.c.bf16 %v363_v9, %v363_v9  ;;  %424 = vrot.lane.b32.xlu1 %v712_v10, %s1039_s6 }
 0x13d   : > { %409 = vrot.lane.b32.xlu0 %v712_v10, %s1040_s9  ;;  %402 = vst.msk [vmem:[%s1247_s30] sm:$0xf] %vm401_vm2, %v400_v12 }
 0x13f   : > { %437 = vrot.lane.b32.xlu1 %v712_v10, %s1041_s29  ;;  %s1278_s29 = scalar_lea.hbm %s1410_s3, %s1270_s28 }
 0x141   : > { %429 = vrot.lane.b32.xlu0 %v400_v12, %s1042_s12 }
 0x143   : > { %416 = vrot.lane.b32.xlu1 %v400_v12, %s1043_s14  ;;  %s884_s14 = scalar_lea.vmem %s1272_s26, 256 }
 0x144   : > { %p885_p6 = scmp.ne.s32.totalorder %s1272_s26, %s884_s14 }
 0x145   : > { %442 = vrot.lane.b32.xlu0 %v400_v12, %s1044_s15 }
 0x146   : > { %p886_p8 = pnand %p885_p6, %p1174_p10 }
 0x147   : > { %450 = vrot.lane.b32.xlu1 %v712_v10, %s1045_s10 }
 0x148   : > { %p887_p12 = pneg %p886_p8 }
 0x1ab   : > { %v366_v13 = vpop.permute.xlu0 %365 }
 0x1ac   : > { %368 = vxpose.xlu0.b32.start.end [1/1] (short) (narrow) %v366_v13, 32 }
 0x1ad   : > { %v425_v14 = vpop.permute.xlu1 %424 }
 0x1ae   : > { %694 = vst.msk [vmem:[%s1252_s16 + $0x4] sm:$0xf] %vm401_vm2, %v425_v14 }
 0x1af   : > { %v410_v15 = vpop.permute.xlu0 %409 }
 0x1b0   : > { %412 = vst.msk [vmem:[%s1252_s16] sm:$0xf] %vm401_vm2, %v410_v15 }
 0x1b1   : > { %v438_v16 = vpop.permute.xlu1 %437 }
 0x1b2   : > { %697 = vst.msk [vmem:[%s1252_s16 + $0x8] sm:$0xf] %vm401_vm2, %v438_v16 }
 0x1b3   : > { %v430_v17 = vpop.permute.xlu0 %429 }
 0x1b4   : > { %695 = vst.msk [vmem:[%s1247_s30 + $0x8] sm:$0xf] %vm401_vm2, %v430_v17 }
 0x1b5   : > { %v417_v18 = vpop.permute.xlu1 %416 }
 0x1b6   : > { %692 = vst.msk [vmem:[%s1247_s30 + $0x4] sm:$0xf] %vm401_vm2, %v417_v18 }
 0x1b7   : > { %v443_v19 = vpop.permute.xlu0 %442 }
 0x1b8   : > { %698 = vst.msk [vmem:[%s1247_s30 + $0xc] sm:$0xf] %vm401_vm2, %v443_v19  ;;  %s1046_s30 = smov [#allocation7]  }
 0x1b9   : > { %v451_v20 = vpop.permute.xlu1 %450  ;;  %s888_s21 = sshll.u32 %s1046_s30, 4  ;;  %s889_s21 = int_to_ptr.vmem [resolvable:$false] %s888_s21 }
 0x1ba   : > { %700 = vst.msk [vmem:[%s1252_s16 + $0xc] sm:$0xf] %vm401_vm2, %v451_v20  ;;  %s890_s15 = scalar_lea.vmem %s889_s21, 512  ;;  %p891_p11 = scmp.lt.s32.totalorder %s1272_s26, %s889_s21 }
 0x1bb   : > { %p892_p0 = scmp.lt.s32.totalorder %s890_s15, %s884_s14 }
 0x1bd   : > { %p893_p5 = por %p892_p0, %p891_p11 }
 0x1bf   : > { %p894_p9 = pnand %p893_p5, %p887_p12 }
 0x1c1   : > { %897 = shalt.err (!%p894_p9)
}
 0x1c2   : > { %s898_s10 = scalar_lea.hbm %s1278_s29, 256  ;;  %s902_s30 = scalar_lea.hbm %s1410_s3, 512 }
 0x1c3   : > { %p899_p1 = scmp.ne.s32.totalorder %s1278_s29, %s898_s10  ;;  %p903_p3 = scmp.lt.u32.totalorder %s1278_s29, %s1410_s3 }
 0x1c4   : > { %p904_p4 = scmp.lt.u32.totalorder %s902_s30, %s898_s10  ;;  %p906_p6 = scmp.lt.u32.totalorder %s898_s10, %s1278_s29 }
 0x1c5   : > { %p900_p2 = pnand %p899_p1, %p1174_p10 }
 0x1c6   : > { %p905_p13 = por %p904_p4, %p903_p3 }
 0x1c7   : > { %p901_p7 = pneg %p900_p2 }
 0x1c8   : > { %p907_p8 = por %p906_p6, %p905_p13 }
 0x1ca   : > { %p908_p12 = pnand %p907_p8, %p901_p7 }
 0x1cc   : > { %911 = shalt.err (!%p908_p12)
}
 0x1cd   : > { %s1047_s14 = smov 4   ;;  %s1429_s15 = scalar_lea.sflag [#allocation4], %s1227_s25 }
 0x1ce   : > { %734 = dma.vmem_to_hbm [thread:$0]  (%p1174_p10), %s1272_s26, 256, %s1278_s29, %s1429_s15, %s1040_s9, %s1040_s9, %s1047_s14  }
 0x1cf   : > { %s286_s12 = scalar_lea.vmem [#allocation8], %s1243_s17  ;;  %s460_s10 = sand.u32 1, %s1111_s24  }
 0x1d0   : > { %s497_s25 = sshll.u32 %s286_s12, 4  ;;  %s514_s8 = sshll.u32 %s1252_s16, 4  ;;  %s1313_s25 = int_to_ptr.vmem [resolvable:$true] %s497_s25  ;;  %s1321_s8 = int_to_ptr.vmem [resolvable:$true] %s514_s8 }
 0x1d1   : > { %s1319_s29 = scalar_lea.hbm %s1411_s4, %s1270_s28  ;;  %s1327_s24 = scalar_lea.hbm %s1412_s5, %s1270_s28 }
 0x1d2   : > { %s1330_s16 = scalar_lea.sflag [#allocation9], %s460_s10  ;;  %s912_s21 = scalar_lea.vmem %s1313_s25, 256 }
 0x1d3   : > { %p913_p11 = scmp.ne.s32.totalorder %s1313_s25, %s912_s21  ;;  %s1048_s15 = smov [#allocation8]  }
 0x1d4   : > { %s916_s17 = sshll.u32 %s1048_s15, 4  ;;  %s917_s17 = int_to_ptr.vmem [resolvable:$false] %s916_s17 }
 0x1d5   : > { %p914_p0 = pnand %p913_p11, %p1174_p10  ;;  %s918_s26 = scalar_lea.vmem %s917_s17, 512 }
 0x1d6   : > { %p919_p9 = scmp.lt.s32.totalorder %s1313_s25, %s917_s17  ;;  %p920_p1 = scmp.lt.s32.totalorder %s918_s26, %s912_s21 }
 0x1d7   : > { %p915_p5 = pneg %p914_p0 }
 0x1d8   : > { %p921_p2 = por %p920_p1, %p919_p9 }
 0x1da   : > { %p922_p7 = pnand %p921_p2, %p915_p5 }
 0x22c   : > { %v384_v21 = vpop.trf.xlu0 }
 0x22d   : > { %v403_v22 = vpack.c.bf16 %v384_v21, %v384_v21 }
 0x22f   : > { %404 = vst.msk [vmem:[%s286_s12] sm:$0xf] %vm401_vm2, %v403_v22 }
 0x230   : > { %v385_v23 = vpop.trf.xlu0 }
 0x231   : > { %v421_v24 = vpack.c.bf16 %v385_v23, %v385_v23 }
 0x233   : > { %693 = vst.msk [vmem:[%s286_s12 + $0x4] sm:$0xf] %vm401_vm2, %v421_v24 }
 0x234   : > { %v386_v25 = vpop.trf.xlu0 }
 0x235   : > { %v434_v26 = vpack.c.bf16 %v386_v25, %v386_v25 }
 0x237   : > { %696 = vst.msk [vmem:[%s286_s12 + $0x8] sm:$0xf] %vm401_vm2, %v434_v26 }
 0x238   : > { %v387_v27 = vpop.trf.xlu0 }
 0x239   : > { %v447_v28 = vpack.c.bf16 %v387_v27, %v387_v27 }
 0x23b   : > { %699 = vst.msk [vmem:[%s286_s12 + $0xc] sm:$0xf] %vm401_vm2, %v447_v28 }
 0x23c   : > { %925 = shalt.err (!%p922_p7)
}
 0x23d   : > { %s926_s28 = scalar_lea.hbm %s1319_s29, 256  ;;  %s930_s6 = scalar_lea.hbm %s1411_s4, 512 }
 0x23e   : > { %p927_p3 = scmp.ne.s32.totalorder %s1319_s29, %s926_s28  ;;  %p931_p6 = scmp.lt.u32.totalorder %s1319_s29, %s1411_s4 }
 0x23f   : > { %p932_p8 = scmp.lt.u32.totalorder %s930_s6, %s926_s28  ;;  %p934_p11 = scmp.lt.u32.totalorder %s926_s28, %s1319_s29 }
 0x240   : > { %p928_p4 = pnand %p927_p3, %p1174_p10 }
 0x241   : > { %p933_p12 = por %p932_p8, %p931_p6 }
 0x242   : > { %p929_p13 = pneg %p928_p4 }
 0x243   : > { %p935_p0 = por %p934_p11, %p933_p12 }
 0x245   : > { %p936_p5 = pnand %p935_p0, %p929_p13 }
 0x247   : > { %939 = shalt.err (!%p936_p5)
}
 0x248   : > { %735 = dma.vmem_to_hbm [thread:$0]  (%p1174_p10), %s1313_s25, 256, %s1319_s29, %s1330_s16, %s1040_s9, %s1040_s9, %s1047_s14  }
 0x249   : > { %s940_s21 = scalar_lea.vmem %s1321_s8, 256  ;;  %s1049_s17 = smov [#allocation10]  }
 0x24a   : > { %p941_p9 = scmp.ne.s32.totalorder %s1321_s8, %s940_s21  ;;  %s944_s26 = sshll.u32 %s1049_s17, 4  ;;  %s945_s26 = int_to_ptr.vmem [resolvable:$false] %s944_s26 }
 0x24b   : > { %s946_s28 = scalar_lea.vmem %s945_s26, 512  ;;  %p947_p7 = scmp.lt.s32.totalorder %s1321_s8, %s945_s26 }
 0x24c   : > { %p942_p1 = pnand %p941_p9, %p1174_p10  ;;  %p948_p3 = scmp.lt.s32.totalorder %s946_s28, %s940_s21 }
 0x24e   : > { %p943_p2 = pneg %p942_p1  ;;  %p949_p4 = por %p948_p3, %p947_p7 }
 0x250   : > { %p950_p13 = pnand %p949_p4, %p943_p2 }
 0x252   : > { %953 = shalt.err (!%p950_p13)
}
 0x253   : > { %s954_s25 = scalar_lea.hbm %s1327_s24, 256  ;;  %s958_s10 = scalar_lea.hbm %s1412_s5, 512 }
 0x254   : > { %p955_p6 = scmp.ne.s32.totalorder %s1327_s24, %s954_s25  ;;  %p959_p11 = scmp.lt.u32.totalorder %s1327_s24, %s1412_s5 }
 0x255   : > { %p960_p0 = scmp.lt.u32.totalorder %s958_s10, %s954_s25  ;;  %p962_p9 = scmp.lt.u32.totalorder %s954_s25, %s1327_s24 }
 0x256   : > { %p956_p8 = pnand %p955_p6, %p1174_p10 }
 0x257   : > { %p961_p5 = por %p960_p0, %p959_p11 }
 0x258   : > { %p957_p12 = pneg %p956_p8 }
 0x259   : > { %p963_p1 = por %p962_p9, %p961_p5 }
 0x25b   : > { %p964_p2 = pnand %p963_p1, %p957_p12 }
 0x25d   : > { %967 = shalt.err (!%p964_p2)
}
 0x25e   : > { %736 = dma.vmem_to_hbm [thread:$0]  (%p1174_p10), %s1321_s8, 256, %s1327_s24, %s1330_s16, %s1040_s9, %s1040_s9, %s1047_s14  }
 0x25f PF: > { %s529_s15 = sand.u32 1, %s1010_s18   ;;  %p1430_p7 = scmp.ne.s32.totalorder %s1418_s27, 0 }
 0x260   : > { %p1431_p3 = scmp.ge.s32.totalorder %s1030_s23, 2  ;;  %s530_s21 = scalar_lea.sflag [#allocation4], %s529_s15 }
 0x262   : > { %p749_p4 = pnand %p1431_p3, %p1430_p7 }
 0x264   : > { %1001 = dma.done.wait (!%p749_p4), %s530_s21, 256  }
 0x265   : > { %1003 = vsyncadd (!%p749_p4), %s530_s21, 4294967040  ;;  %s1432_s11 = sadd.s32 4294967294, %s1030_s23  }
 0x266   : > { %s538_s17 = sand.u32 1, %s1432_s11  }
 0x267   : > { %s539_s26 = scalar_lea.sflag [#allocation9], %s538_s17 }
 0x268   : > { %1005 = dma.done.wait (!%p749_p4), %s539_s26, 512  }
 0x269   : > { %1007 = vsyncadd (!%p749_p4), %s539_s26, 4294966784  ;;  %s26_s23 = sadd.s32 1, %s1030_s23   ;;  %s1433_s18 = smov %s1014_s19 }
 0x26a   : > { %p23_p10 = scmp.ge.s32.totalorder %s26_s23, 4   ;;  %s1434_s19 = smov %s1018_s20 }
 0x26b   : > { %s1435_s20 = smov %s1183_s13  ;;  %s1436_s21 = smov %s1026_s22 }
 0x26c   : > { %s1437_s22 = smov %s1439_s7  ;;  %25 = sbr.rel (!%p23_p10) target bundleno = 9 (0x9), region = 122 }
 0x273   :  { %553 = vsyncpa [#allocation3], 1 }
 0x274   :  { %555 = vsyncpa [#allocation3 + $0x1], 1 }
 0x275   :  { %556 = vsyncpa [#allocation6], 1 }
 0x276   :  { %557 = vsyncpa [#allocation4], 1 }
 0x277   :  { %559 = vsyncpa [#allocation4 + $0x1], 1 }
 0x278   :  { %560 = vsyncpa [#allocation9], 1 }
 0x279   :  { %562 = vsyncpa [#allocation9 + $0x1], 1 }

</bundles_post_ra>
